<compile_context>
chip_gen: v7x
topology: tpu7x:2x2x1
jax: 0.10.0
libtpu: 0.0.40
codegen_flags: <defaults>
</compile_context>

<pallas_src>
import functools

import jax
import jax.numpy as jnp
from jax.experimental import pallas as pl
from jax.experimental.pallas import tpu as pltpu


# ---------------------------------------------------------------------------
# Small helpers
# ---------------------------------------------------------------------------

def _rup(x, m):
    return ((x + m - 1) // m) * m


def _vmem_f32_bytes(shape):
    """(8,128)-padded f32 VMEM footprint of an array of `shape`."""
    if len(shape) == 0:
        return 4 * 8 * 128
    if len(shape) == 1:
        return 4 * 8 * _rup(int(shape[0]), 128)
    lead = 1
    for d in shape[:-2]:
        lead *= int(d)
    return 4 * lead * _rup(int(shape[-2]), 8) * _rup(int(shape[-1]), 128)


def _choose_tile_hw(hw, cap=1024):
    """Whole row if small, else the largest multiple of 128 dividing HW (<= cap)."""
    if hw <= cap:
        return hw
    for t in range(cap, 127, -1):
        if t % 128 == 0 and hw % t == 0:
            return t
    # TODO(synk): ragged HW (no 128-multiple divisor) falls back to one
    #             whole-row tile; a masked last-tile path would be needed for
    #             huge ragged maps.
    return hw


# Combined padded footprint below which all four heads run as one single-step
# pallas_call (conservative w.r.t. v7x's 32 MiB scoped / 64 MiB physical VMEM).
_FUSED_VMEM_BUDGET_BYTES = 24 << 20


# ---------------------------------------------------------------------------
# Fused path: all heads in ONE single-step pallas_call (whole slabs in VMEM)
# ---------------------------------------------------------------------------

def _fused_heads_kernel(*refs, n_heads, n_batch, eps):
    """For each head h:
         x_h: (N, Cin_h, HW_h)  w_h: (Cout_h, Cin_h)  g_h/b_h: (Cout_h, 1)
         o_h: (N, Cout_h, HW_h)
       1x1 conv == channel matmul (HW on the lane axis); raw conv results are
       staged directly in o_h, then the folded training-mode-BN scale/shift is
       applied in place with one vectorized pass (conv bias cancels in BN)."""
    xs = refs[0:n_heads]
    ws = refs[n_heads:2 * n_heads]
    gs = refs[2 * n_heads:3 * n_heads]
    bs = refs[3 * n_heads:4 * n_heads]
    outs = refs[4 * n_heads:5 * n_heads]

    for h in range(n_heads):
        x_ref, w_ref, g_ref, b_ref, o_ref = xs[h], ws[h], gs[h], bs[h], outs[h]
        cout = w_ref.shape[0]
        hw = x_ref.shape[2]
        w = w_ref[...]                                           # (Cout, Cin)

        ch_sum = jnp.zeros((cout, 1), jnp.float32)
        ch_ssq = jnp.zeros((cout, 1), jnp.float32)
        for n in range(n_batch):
            y = jnp.dot(w, x_ref[n], preferred_element_type=jnp.float32)  # (Cout, HW)
            ch_sum = ch_sum + jnp.sum(y, axis=1, keepdims=True)
            ch_ssq = ch_ssq + jnp.sum(y * y, axis=1, keepdims=True)
            o_ref[n] = y                                         # park raw conv result

        inv_m = 1.0 / float(n_batch * hw)
        mean = ch_sum * inv_m                                    # (Cout, 1)
        var = jnp.maximum(ch_ssq * inv_m - mean * mean, 0.0)     # biased, clamped
        scale = g_ref[...] * jax.lax.rsqrt(var + eps)
        shift = b_ref[...] - mean * scale
        # Single vectorized in-place scale/shift over the resident output block.
        o_ref[...] = o_ref[...] * scale.reshape(1, cout, 1) + shift.reshape(1, cout, 1)


def _fused_skip_heads(params, feats, eps=1e-5):
    n_heads = len(feats)
    n_batch = feats[0].shape[0]

    xs, ws, gs, bs, out_shapes, spatial = [], [], [], [], [], []
    est = 2 << 20  # params / slack
    for x, (w, _bias, g, be) in zip(feats, params):
        n, cin, h, wd = x.shape
        cout = w.shape[0]
        hw = h * wd
        xs.append(x.reshape(n, cin, hw))                  # free reshape, stays NCHW
        ws.append(w.reshape(cout, cin).astype(jnp.float32))
        gs.append(g.reshape(cout, 1).astype(jnp.float32))
        bs.append(be.reshape(cout, 1).astype(jnp.float32))
        out_shapes.append(jax.ShapeDtypeStruct((n, cout, hw), jnp.float32))
        spatial.append((h, wd))
        est += (_vmem_f32_bytes((n, cin, hw)) + _vmem_f32_bytes((n, cout, hw))
                + _vmem_f32_bytes((cout, cin)) + 2 * _vmem_f32_bytes((cout, 1)))

    vmem_limit = int(min(48 << 20, max(32 << 20, 2 * est)))
    kernel = functools.partial(_fused_heads_kernel,
                               n_heads=n_heads, n_batch=n_batch, eps=eps)

    outs = pl.pallas_call(
        kernel,
        out_shape=tuple(out_shapes),
        compiler_params=pltpu.CompilerParams(vmem_limit_bytes=vmem_limit),
    )(*xs, *ws, *gs, *bs)

    return tuple(o.reshape(o.shape[0], o.shape[1], h, wd)
                 for o, (h, wd) in zip(outs, spatial))


# ---------------------------------------------------------------------------
# Large-map fallback: tiled two-pass (Pallas conv+stats, XLA BN epilogue)
# ---------------------------------------------------------------------------

def _conv1x1_stats_kernel(x_ref, w_ref, y_ref, sum_ref, ssq_ref, *, n_hw):
    """x_ref: (Cin, tile_hw)   w_ref: (Cout, Cin)
       y_ref: (Cout, tile_hw)  -- follows the grid (lane-dense streamed store)
       sum_ref / ssq_ref: (Cout, 1) -- resident accumulators (constant index map)."""
    n = pl.program_id(0)
    j = pl.program_id(1)
    t = n * n_hw + j

    @pl.when(t == 0)
    def _init():
        sum_ref[...] = jnp.zeros_like(sum_ref)
        ssq_ref[...] = jnp.zeros_like(ssq_ref)

    y = jnp.dot(w_ref[...], x_ref[...], preferred_element_type=jnp.float32)
    y_ref[...] = y
    sum_ref[...] += jnp.sum(y, axis=1, keepdims=True)
    ssq_ref[...] += jnp.sum(y * y, axis=1, keepdims=True)


def conv1x1_bn_tiled(x_nchw, w_oihw, gamma, beta, eps=1e-5, tile_hw_cap=1024):
    """Per-head fallback for maps too large to keep fully VMEM-resident:
       pass 1 = Pallas 1x1-conv + per-channel batch stats (conv tiles stream
       straight back to HBM); pass 2 = folded-BN scale/shift as XLA epilogue."""
    N, Cin, H, W = x_nchw.shape
    Cout = w_oihw.shape[0]                       # PyTorch conv weight: (Cout, Cin, 1, 1)
    HW = H * W
    tile_hw = _choose_tile_hw(HW, tile_hw_cap)
    n_hw = HW // tile_hw

    x3 = x_nchw.reshape(N, Cin, HW)
    w2 = w_oihw.reshape(Cout, Cin).astype(jnp.float32)

    est = (2 * _vmem_f32_bytes((Cin, tile_hw))      # double-buffered x tiles
           + 2 * _vmem_f32_bytes((Cout, tile_hw))   # double-buffered y tiles
           + 2 * _vmem_f32_bytes((Cout, Cin))       # weight
           + 4 * _vmem_f32_bytes((Cout, 1))         # stat accumulators
           + (1 << 20))                             # slack
    vmem_limit = int(min(48 << 20, max(16 << 20, 2 * est)))

    kernel = functools.partial(_conv1x1_stats_kernel, n_hw=n_hw)
    y3, csum, cssq = pl.pallas_call(
        kernel,
        out_shape=(jax.ShapeDtypeStruct((N, Cout, HW), jnp.float32),
                   jax.ShapeDtypeStruct((Cout, 1), jnp.float32),
                   jax.ShapeDtypeStruct((Cout, 1), jnp.float32)),
        grid_spec=pltpu.PrefetchScalarGridSpec(
            num_scalar_prefetch=0,
            grid=(N, n_hw),
            in_specs=[
                pl.BlockSpec((None, Cin, tile_hw), lambda n, j: (n, 0, j)),
                pl.BlockSpec((Cout, Cin), lambda n, j: (0, 0)),
            ],
            out_specs=(
                pl.BlockSpec((None, Cout, tile_hw), lambda n, j: (n, 0, j)),
                pl.BlockSpec((Cout, 1), lambda n, j: (0, 0)),
                pl.BlockSpec((Cout, 1), lambda n, j: (0, 0)),
            ),
        ),
        # Stats carry sequentially across the whole grid.
        compiler_params=pltpu.CompilerParams(
            dimension_semantics=("arbitrary", "arbitrary"),
            vmem_limit_bytes=vmem_limit),
    )(x3, w2)

    # Folded training-mode BN epilogue (tiny); conv bias cancels with the mean.
    inv_m = 1.0 / float(N * HW)
    mean = csum * inv_m                                      # (Cout, 1)
    var = jnp.maximum(cssq * inv_m - mean * mean, 0.0)       # biased, clamped
    scale = gamma.reshape(Cout, 1).astype(jnp.float32) * jax.lax.rsqrt(var + eps)
    shift = beta.reshape(Cout, 1).astype(jnp.float32) - mean * scale
    out = y3 * scale[None, :, :] + shift[None, :, :]
    return out.reshape(N, Cout, H, W)


# ---------------------------------------------------------------------------
# Forward dispatch
# ---------------------------------------------------------------------------

def skip_head_forward(params, feats, eps=1e-5):
    """params: per-head (w_oihw, bias, gamma, beta); feats: per-head NCHW arrays."""
    est = 2 << 20
    for x, (w, _b, _g, _be) in zip(feats, params):
        n, cin, h, wd = x.shape
        cout = w.shape[0]
        hw = h * wd
        est += (_vmem_f32_bytes((n, cin, hw)) + _vmem_f32_bytes((n, cout, hw))
                + _vmem_f32_bytes((cout, cin)) + 2 * _vmem_f32_bytes((cout, 1)))
    if est <= _FUSED_VMEM_BUDGET_BYTES:
        return _fused_skip_heads(params, feats, eps=eps)
    # Large maps: one two-pass tiled call per head (output never VMEM-resident).
    return tuple(conv1x1_bn_tiled(x, w, g, be, eps=eps)
                 for x, (w, _b, g, be) in zip(feats, params))


def conv1x1_bn_reference(x_nchw, w_oihw, bias, gamma, beta, eps=1e-5):
    """Pure-JAX (true-f32) reference matching the PyTorch module's forward."""
    Cout, Cin = w_oihw.shape[:2]
    y = jnp.einsum("nchw,oc->nohw", x_nchw, w_oihw.reshape(Cout, Cin),
                   precision=jax.lax.Precision.HIGHEST)
    y = y + bias.reshape(1, Cout, 1, 1)
    mean = jnp.mean(y, axis=(0, 2, 3), keepdims=True)
    var = jnp.mean(jnp.square(y - mean), axis=(0, 2, 3), keepdims=True)
    y = (y - mean) * jax.lax.rsqrt(var + eps)
    return y * gamma.reshape(1, Cout, 1, 1) + beta.reshape(1, Cout, 1, 1)


class FeatureExtractorSegmentSkipHead:
    """JAX/Pallas port of the sk{5,4,3,2} + bn{5,4,3,2} head of
    FeatureExtractor_segment (kernel_size=1, padding=0, BN in training mode)."""

    def __init__(self, key, skip_dims_in=(512, 256, 128, 64), hidden_size=32):
        self.hidden_size = hidden_size
        out_dims = (hidden_size, hidden_size, hidden_size // 2, hidden_size // 4)
        self.params = []
        for i, (cin, cout) in enumerate(zip(skip_dims_in, out_dims)):
            kw, kb = jax.random.split(jax.random.fold_in(key, i))
            bound = 1.0 / (cin ** 0.5)  # PyTorch conv default init bound (k=1)
            w = jax.random.uniform(kw, (cout, cin, 1, 1), jnp.float32, -bound, bound)
            b = jax.random.uniform(kb, (cout,), jnp.float32, -bound, bound)
            gamma = jnp.ones((cout,), jnp.float32)   # BatchNorm2d default init
            beta = jnp.zeros((cout,), jnp.float32)
            self.params.append((w, b, gamma, beta))
        # One jit'ed program for all four heads.
        self._forward = jax.jit(self._forward_impl)

    @staticmethod
    def _forward_impl(params, x5, x4, x3, x2):
        # Conv bias intentionally not used: BN's batch-mean subtraction cancels it.
        return skip_head_forward(params, (x5, x4, x3, x2))

    def __call__(self, x5, x4, x3, x2):
        return self._forward(tuple(self.params), x5, x4, x3, x2)


if __name__ == "__main__":
    key = jax.random.PRNGKey(0)
    k_feat, k_param = jax.random.split(key)

    # Small stand-in multi-scale backbone features (NCHW, batch=2,
    # ResNet34-like channel counts, tiny spatial sizes).
    k5, k4, k3, k2 = jax.random.split(k_feat, 4)
    x5 = jax.random.normal(k5, (2, 512, 4, 4), jnp.float32)
    x4 = jax.random.normal(k4, (2, 256, 8, 8), jnp.float32)
    x3 = jax.random.normal(k3, (2, 128, 16, 16), jnp.float32)
    x2 = jax.random.normal(k2, (2, 64, 32, 32), jnp.float32)

    model = FeatureExtractorSegmentSkipHead(k_param, hidden_size=32)

    outs = jax.block_until_ready(model(x5, x4, x3, x2))   # fused single-call path

    refs = [conv1x1_bn_reference(x, *p)
            for x, p in zip((x5, x4, x3, x2), model.params)]
    # Kernel matmuls use the backend default precision (MXU); reference is true
    # f32, hence the modest tolerance.
    for o, r in zip(outs, refs):
        assert o.shape == r.shape, (o.shape, r.shape)
        assert jnp.allclose(o, r, rtol=3e-2, atol=3e-2), float(jnp.max(jnp.abs(o - r)))

    # Also exercise the tiled large-map fallback path explicitly:
    #   (a) forced multi-step HW grid on x2, (b) sub-128-lane map (x5).
    w, _b, g, be = model.params[3]
    t2 = jax.block_until_ready(conv1x1_bn_tiled(x2, w, g, be, tile_hw_cap=256))
    assert jnp.allclose(t2, refs[3], rtol=3e-2, atol=3e-2), \
        float(jnp.max(jnp.abs(t2 - refs[3])))
    w, _b, g, be = model.params[0]
    t5 = jax.block_until_ready(conv1x1_bn_tiled(x5, w, g, be))
    assert jnp.allclose(t5, refs[0], rtol=3e-2, atol=3e-2), \
        float(jnp.max(jnp.abs(t5 - refs[0])))

    print("KERNEL_OK")
</pallas_src>

<mosaic_0001>
module attributes {stable_mosaic.version = 11 : i64} {
  func.func @_fused_heads_kernel(%arg0: memref<2x512x16xf32, #tpu.memory_space<vmem>>, %arg1: memref<2x256x64xf32, #tpu.memory_space<vmem>>, %arg2: memref<2x128x256xf32, #tpu.memory_space<vmem>>, %arg3: memref<2x64x1024xf32, #tpu.memory_space<vmem>>, %arg4: memref<32x512xf32, #tpu.memory_space<vmem>>, %arg5: memref<32x256xf32, #tpu.memory_space<vmem>>, %arg6: memref<16x128xf32, #tpu.memory_space<vmem>>, %arg7: memref<8x64xf32, #tpu.memory_space<vmem>>, %arg8: memref<32x1xf32, #tpu.memory_space<vmem>>, %arg9: memref<32x1xf32, #tpu.memory_space<vmem>>, %arg10: memref<16x1xf32, #tpu.memory_space<vmem>>, %arg11: memref<8x1xf32, #tpu.memory_space<vmem>>, %arg12: memref<32x1xf32, #tpu.memory_space<vmem>>, %arg13: memref<32x1xf32, #tpu.memory_space<vmem>>, %arg14: memref<16x1xf32, #tpu.memory_space<vmem>>, %arg15: memref<8x1xf32, #tpu.memory_space<vmem>>, %arg16: memref<2x32x16xf32, #tpu.memory_space<vmem>>, %arg17: memref<2x32x64xf32, #tpu.memory_space<vmem>>, %arg18: memref<2x16x256xf32, #tpu.memory_space<vmem>>, %arg19: memref<2x8x1024xf32, #tpu.memory_space<vmem>>) attributes {dimension_semantics = [], scalar_prefetch = 0 : i64, scratch_operands = 0 : i64, tpu.core_type = #tpu.core_type<tc>} {
    %c0 = arith.constant 0 : index
    %c0_0 = arith.constant 0 : index
    %0 = vector.load %arg4[%c0, %c0_0] : memref<32x512xf32, #tpu.memory_space<vmem>>, vector<32x512xf32>
    %cst = arith.constant 0.000000e+00 : f32
    %1 = vector.broadcast %cst : f32 to vector<32x1xf32>
    %cst_1 = arith.constant 0.000000e+00 : f32
    %2 = vector.broadcast %cst_1 : f32 to vector<32x1xf32>
    %c0_2 = arith.constant 0 : index
    %c0_3 = arith.constant 0 : index
    %c0_4 = arith.constant 0 : index
    %3 = vector.load %arg0[%c0_2, %c0_3, %c0_4] : memref<2x512x16xf32, #tpu.memory_space<vmem>>, vector<1x512x16xf32>
    %4 = vector.shape_cast %3 : vector<1x512x16xf32> to vector<512x16xf32>
    %cst_5 = arith.constant dense<0.000000e+00> : vector<32x16xf32>
    %5 = tpu.matmul %0, %4, %cst_5 {dimension_numbers = #tpu.dot_dimension_numbers<[1], [0], [0], [1], [0, 0, 1, 1], [], []>} : vector<32x512xf32>, vector<512x16xf32>, vector<32x16xf32> -> vector<32x16xf32>
    %cst_6 = arith.constant dense<0.000000e+00> : vector<32xf32>
    %6 = vector.multi_reduction <add>, %5, %cst_6 [1] : vector<32x16xf32> to vector<32xf32>
    %7 = vector.shape_cast %6 : vector<32xf32> to vector<32x1xf32>
    %8 = arith.addf %1, %7 : vector<32x1xf32>
    %9 = arith.mulf %5, %5 : vector<32x16xf32>
    %cst_7 = arith.constant dense<0.000000e+00> : vector<32xf32>
    %10 = vector.multi_reduction <add>, %9, %cst_7 [1] : vector<32x16xf32> to vector<32xf32>
    %11 = vector.shape_cast %10 : vector<32xf32> to vector<32x1xf32>
    %12 = arith.addf %2, %11 : vector<32x1xf32>
    %c0_8 = arith.constant 0 : index
    %c0_9 = arith.constant 0 : index
    %c0_10 = arith.constant 0 : index
    %13 = vector.load %arg16[%c0_8, %c0_9, %c0_10] : memref<2x32x16xf32, #tpu.memory_space<vmem>>, vector<1x32x16xf32>
    %14 = vector.shape_cast %13 : vector<1x32x16xf32> to vector<32x16xf32>
    %15 = vector.shape_cast %5 : vector<32x16xf32> to vector<1x32x16xf32>
    tpu.vector_store %arg16[%c0_8, %c0_9, %c0_10], %15 {strides = array<i32>} : memref<2x32x16xf32, #tpu.memory_space<vmem>>, vector<1x32x16xf32>,
    %c1 = arith.constant 1 : index
    %c0_11 = arith.constant 0 : index
    %c0_12 = arith.constant 0 : index
    %16 = vector.load %arg0[%c1, %c0_11, %c0_12] : memref<2x512x16xf32, #tpu.memory_space<vmem>>, vector<1x512x16xf32>
    %17 = vector.shape_cast %16 : vector<1x512x16xf32> to vector<512x16xf32>
    %cst_13 = arith.constant dense<0.000000e+00> : vector<32x16xf32>
    %18 = tpu.matmul %0, %17, %cst_13 {dimension_numbers = #tpu.dot_dimension_numbers<[1], [0], [0], [1], [0, 0, 1, 1], [], []>} : vector<32x512xf32>, vector<512x16xf32>, vector<32x16xf32> -> vector<32x16xf32>
    %cst_14 = arith.constant dense<0.000000e+00> : vector<32xf32>
    %19 = vector.multi_reduction <add>, %18, %cst_14 [1] : vector<32x16xf32> to vector<32xf32>
    %20 = vector.shape_cast %19 : vector<32xf32> to vector<32x1xf32>
    %21 = arith.addf %8, %20 : vector<32x1xf32>
    %22 = arith.mulf %18, %18 : vector<32x16xf32>
    %cst_15 = arith.constant dense<0.000000e+00> : vector<32xf32>
    %23 = vector.multi_reduction <add>, %22, %cst_15 [1] : vector<32x16xf32> to vector<32xf32>
    %24 = vector.shape_cast %23 : vector<32xf32> to vector<32x1xf32>
    %25 = arith.addf %12, %24 : vector<32x1xf32>
    %c1_16 = arith.constant 1 : index
    %c0_17 = arith.constant 0 : index
    %c0_18 = arith.constant 0 : index
    %26 = vector.load %arg16[%c1_16, %c0_17, %c0_18] : memref<2x32x16xf32, #tpu.memory_space<vmem>>, vector<1x32x16xf32>
    %27 = vector.shape_cast %26 : vector<1x32x16xf32> to vector<32x16xf32>
    %28 = vector.shape_cast %18 : vector<32x16xf32> to vector<1x32x16xf32>
    tpu.vector_store %arg16[%c1_16, %c0_17, %c0_18], %28 {strides = array<i32>} : memref<2x32x16xf32, #tpu.memory_space<vmem>>, vector<1x32x16xf32>,
    %cst_19 = arith.constant 3.125000e-02 : f32
    %29 = vector.broadcast %cst_19 : f32 to vector<32x1xf32>
    %30 = arith.mulf %21, %29 : vector<32x1xf32>
    %cst_20 = arith.constant 3.125000e-02 : f32
    %31 = vector.broadcast %cst_20 : f32 to vector<32x1xf32>
    %32 = arith.mulf %25, %31 : vector<32x1xf32>
    %33 = arith.mulf %30, %30 : vector<32x1xf32>
    %34 = arith.subf %32, %33 : vector<32x1xf32>
    %cst_21 = arith.constant 0.000000e+00 : f32
    %35 = vector.broadcast %cst_21 : f32 to vector<32x1xf32>
    %36 = arith.maximumf %34, %35 : vector<32x1xf32>
    %c0_22 = arith.constant 0 : index
    %c0_23 = arith.constant 0 : index
    %37 = vector.load %arg8[%c0_22, %c0_23] : memref<32x1xf32, #tpu.memory_space<vmem>>, vector<32x1xf32>
    %cst_24 = arith.constant 9.99999974E-6 : f32
    %38 = vector.broadcast %cst_24 : f32 to vector<32x1xf32>
    %39 = arith.addf %36, %38 : vector<32x1xf32>
    %40 = math.rsqrt %39 : vector<32x1xf32>
    %41 = arith.mulf %37, %40 : vector<32x1xf32>
    %c0_25 = arith.constant 0 : index
    %c0_26 = arith.constant 0 : index
    %42 = vector.load %arg12[%c0_25, %c0_26] : memref<32x1xf32, #tpu.memory_space<vmem>>, vector<32x1xf32>
    %43 = arith.mulf %30, %41 : vector<32x1xf32>
    %44 = arith.subf %42, %43 : vector<32x1xf32>
    %c0_27 = arith.constant 0 : index
    %c0_28 = arith.constant 0 : index
    %c0_29 = arith.constant 0 : index
    %45 = vector.load %arg16[%c0_27, %c0_28, %c0_29] : memref<2x32x16xf32, #tpu.memory_space<vmem>>, vector<2x32x16xf32>
    %46 = vector.shape_cast %41 : vector<32x1xf32> to vector<1x32x1xf32>
    %47 = vector.broadcast %46 : vector<1x32x1xf32> to vector<2x32x16xf32>
    %48 = arith.mulf %45, %47 : vector<2x32x16xf32>
    %49 = vector.shape_cast %44 : vector<32x1xf32> to vector<1x32x1xf32>
    %50 = vector.broadcast %49 : vector<1x32x1xf32> to vector<2x32x16xf32>
    %51 = arith.addf %48, %50 : vector<2x32x16xf32>
    %c0_30 = arith.constant 0 : index
    %c0_31 = arith.constant 0 : index
    %c0_32 = arith.constant 0 : index
    %52 = vector.load %arg16[%c0_30, %c0_31, %c0_32] : memref<2x32x16xf32, #tpu.memory_space<vmem>>, vector<2x32x16xf32>
    tpu.vector_store %arg16[%c0_30, %c0_31, %c0_32], %51 {strides = array<i32>} : memref<2x32x16xf32, #tpu.memory_space<vmem>>, vector<2x32x16xf32>,
    %c0_33 = arith.constant 0 : index
    %c0_34 = arith.constant 0 : index
    %53 = vector.load %arg5[%c0_33, %c0_34] : memref<32x256xf32, #tpu.memory_space<vmem>>, vector<32x256xf32>
    %cst_35 = arith.constant 0.000000e+00 : f32
    %54 = vector.broadcast %cst_35 : f32 to vector<32x1xf32>
    %cst_36 = arith.constant 0.000000e+00 : f32
    %55 = vector.broadcast %cst_36 : f32 to vector<32x1xf32>
    %c0_37 = arith.constant 0 : index
    %c0_38 = arith.constant 0 : index
    %c0_39 = arith.constant 0 : index
    %56 = vector.load %arg1[%c0_37, %c0_38, %c0_39] : memref<2x256x64xf32, #tpu.memory_space<vmem>>, vector<1x256x64xf32>
    %57 = vector.shape_cast %56 : vector<1x256x64xf32> to vector<256x64xf32>
    %cst_40 = arith.constant dense<0.000000e+00> : vector<32x64xf32>
    %58 = tpu.matmul %53, %57, %cst_40 {dimension_numbers = #tpu.dot_dimension_numbers<[1], [0], [0], [1], [0, 0, 1, 1], [], []>} : vector<32x256xf32>, vector<256x64xf32>, vector<32x64xf32> -> vector<32x64xf32>
    %cst_41 = arith.constant dense<0.000000e+00> : vector<32xf32>
    %59 = vector.multi_reduction <add>, %58, %cst_41 [1] : vector<32x64xf32> to vector<32xf32>
    %60 = vector.shape_cast %59 : vector<32xf32> to vector<32x1xf32>
    %61 = arith.addf %54, %60 : vector<32x1xf32>
    %62 = arith.mulf %58, %58 : vector<32x64xf32>
    %cst_42 = arith.constant dense<0.000000e+00> : vector<32xf32>
    %63 = vector.multi_reduction <add>, %62, %cst_42 [1] : vector<32x64xf32> to vector<32xf32>
    %64 = vector.shape_cast %63 : vector<32xf32> to vector<32x1xf32>
    %65 = arith.addf %55, %64 : vector<32x1xf32>
    %c0_43 = arith.constant 0 : index
    %c0_44 = arith.constant 0 : index
    %c0_45 = arith.constant 0 : index
    %66 = vector.load %arg17[%c0_43, %c0_44, %c0_45] : memref<2x32x64xf32, #tpu.memory_space<vmem>>, vector<1x32x64xf32>
    %67 = vector.shape_cast %66 : vector<1x32x64xf32> to vector<32x64xf32>
    %68 = vector.shape_cast %58 : vector<32x64xf32> to vector<1x32x64xf32>
    tpu.vector_store %arg17[%c0_43, %c0_44, %c0_45], %68 {strides = array<i32>} : memref<2x32x64xf32, #tpu.memory_space<vmem>>, vector<1x32x64xf32>,
    %c1_46 = arith.constant 1 : index
    %c0_47 = arith.constant 0 : index
    %c0_48 = arith.constant 0 : index
    %69 = vector.load %arg1[%c1_46, %c0_47, %c0_48] : memref<2x256x64xf32, #tpu.memory_space<vmem>>, vector<1x256x64xf32>
    %70 = vector.shape_cast %69 : vector<1x256x64xf32> to vector<256x64xf32>
    %cst_49 = arith.constant dense<0.000000e+00> : vector<32x64xf32>
    %71 = tpu.matmul %53, %70, %cst_49 {dimension_numbers = #tpu.dot_dimension_numbers<[1], [0], [0], [1], [0, 0, 1, 1], [], []>} : vector<32x256xf32>, vector<256x64xf32>, vector<32x64xf32> -> vector<32x64xf32>
    %cst_50 = arith.constant dense<0.000000e+00> : vector<32xf32>
    %72 = vector.multi_reduction <add>, %71, %cst_50 [1] : vector<32x64xf32> to vector<32xf32>
    %73 = vector.shape_cast %72 : vector<32xf32> to vector<32x1xf32>
    %74 = arith.addf %61, %73 : vector<32x1xf32>
    %75 = arith.mulf %71, %71 : vector<32x64xf32>
    %cst_51 = arith.constant dense<0.000000e+00> : vector<32xf32>
    %76 = vector.multi_reduction <add>, %75, %cst_51 [1] : vector<32x64xf32> to vector<32xf32>
    %77 = vector.shape_cast %76 : vector<32xf32> to vector<32x1xf32>
    %78 = arith.addf %65, %77 : vector<32x1xf32>
    %c1_52 = arith.constant 1 : index
    %c0_53 = arith.constant 0 : index
    %c0_54 = arith.constant 0 : index
    %79 = vector.load %arg17[%c1_52, %c0_53, %c0_54] : memref<2x32x64xf32, #tpu.memory_space<vmem>>, vector<1x32x64xf32>
    %80 = vector.shape_cast %79 : vector<1x32x64xf32> to vector<32x64xf32>
    %81 = vector.shape_cast %71 : vector<32x64xf32> to vector<1x32x64xf32>
    tpu.vector_store %arg17[%c1_52, %c0_53, %c0_54], %81 {strides = array<i32>} : memref<2x32x64xf32, #tpu.memory_space<vmem>>, vector<1x32x64xf32>,
    %cst_55 = arith.constant 7.812500e-03 : f32
    %82 = vector.broadcast %cst_55 : f32 to vector<32x1xf32>
    %83 = arith.mulf %74, %82 : vector<32x1xf32>
    %cst_56 = arith.constant 7.812500e-03 : f32
    %84 = vector.broadcast %cst_56 : f32 to vector<32x1xf32>
    %85 = arith.mulf %78, %84 : vector<32x1xf32>
    %86 = arith.mulf %83, %83 : vector<32x1xf32>
    %87 = arith.subf %85, %86 : vector<32x1xf32>
    %cst_57 = arith.constant 0.000000e+00 : f32
    %88 = vector.broadcast %cst_57 : f32 to vector<32x1xf32>
    %89 = arith.maximumf %87, %88 : vector<32x1xf32>
    %c0_58 = arith.constant 0 : index
    %c0_59 = arith.constant 0 : index
    %90 = vector.load %arg9[%c0_58, %c0_59] : memref<32x1xf32, #tpu.memory_space<vmem>>, vector<32x1xf32>
    %cst_60 = arith.constant 9.99999974E-6 : f32
    %91 = vector.broadcast %cst_60 : f32 to vector<32x1xf32>
    %92 = arith.addf %89, %91 : vector<32x1xf32>
    %93 = math.rsqrt %92 : vector<32x1xf32>
    %94 = arith.mulf %90, %93 : vector<32x1xf32>
    %c0_61 = arith.constant 0 : index
    %c0_62 = arith.constant 0 : index
    %95 = vector.load %arg13[%c0_61, %c0_62] : memref<32x1xf32, #tpu.memory_space<vmem>>, vector<32x1xf32>
    %96 = arith.mulf %83, %94 : vector<32x1xf32>
    %97 = arith.subf %95, %96 : vector<32x1xf32>
    %c0_63 = arith.constant 0 : index
    %c0_64 = arith.constant 0 : index
    %c0_65 = arith.constant 0 : index
    %98 = vector.load %arg17[%c0_63, %c0_64, %c0_65] : memref<2x32x64xf32, #tpu.memory_space<vmem>>, vector<2x32x64xf32>
    %99 = vector.shape_cast %94 : vector<32x1xf32> to vector<1x32x1xf32>
    %100 = vector.broadcast %99 : vector<1x32x1xf32> to vector<2x32x64xf32>
    %101 = arith.mulf %98, %100 : vector<2x32x64xf32>
    %102 = vector.shape_cast %97 : vector<32x1xf32> to vector<1x32x1xf32>
    %103 = vector.broadcast %102 : vector<1x32x1xf32> to vector<2x32x64xf32>
    %104 = arith.addf %101, %103 : vector<2x32x64xf32>
    %c0_66 = arith.constant 0 : index
    %c0_67 = arith.constant 0 : index
    %c0_68 = arith.constant 0 : index
    %105 = vector.load %arg17[%c0_66, %c0_67, %c0_68] : memref<2x32x64xf32, #tpu.memory_space<vmem>>, vector<2x32x64xf32>
    tpu.vector_store %arg17[%c0_66, %c0_67, %c0_68], %104 {strides = array<i32>} : memref<2x32x64xf32, #tpu.memory_space<vmem>>, vector<2x32x64xf32>,
    %c0_69 = arith.constant 0 : index
    %c0_70 = arith.constant 0 : index
    %106 = vector.load %arg6[%c0_69, %c0_70] : memref<16x128xf32, #tpu.memory_space<vmem>>, vector<16x128xf32>
    %cst_71 = arith.constant 0.000000e+00 : f32
    %107 = vector.broadcast %cst_71 : f32 to vector<16x1xf32>
    %cst_72 = arith.constant 0.000000e+00 : f32
    %108 = vector.broadcast %cst_72 : f32 to vector<16x1xf32>
    %c0_73 = arith.constant 0 : index
    %c0_74 = arith.constant 0 : index
    %c0_75 = arith.constant 0 : index
    %109 = vector.load %arg2[%c0_73, %c0_74, %c0_75] : memref<2x128x256xf32, #tpu.memory_space<vmem>>, vector<1x128x256xf32>
    %110 = vector.shape_cast %109 : vector<1x128x256xf32> to vector<128x256xf32>
    %cst_76 = arith.constant dense<0.000000e+00> : vector<16x256xf32>
    %111 = tpu.matmul %106, %110, %cst_76 {dimension_numbers = #tpu.dot_dimension_numbers<[1], [0], [0], [1], [0, 0, 1, 1], [], []>} : vector<16x128xf32>, vector<128x256xf32>, vector<16x256xf32> -> vector<16x256xf32>
    %cst_77 = arith.constant dense<0.000000e+00> : vector<16xf32>
    %112 = vector.multi_reduction <add>, %111, %cst_77 [1] : vector<16x256xf32> to vector<16xf32>
    %113 = vector.shape_cast %112 : vector<16xf32> to vector<16x1xf32>
    %114 = arith.addf %107, %113 : vector<16x1xf32>
    %115 = arith.mulf %111, %111 : vector<16x256xf32>
    %cst_78 = arith.constant dense<0.000000e+00> : vector<16xf32>
    %116 = vector.multi_reduction <add>, %115, %cst_78 [1] : vector<16x256xf32> to vector<16xf32>
    %117 = vector.shape_cast %116 : vector<16xf32> to vector<16x1xf32>
    %118 = arith.addf %108, %117 : vector<16x1xf32>
    %c0_79 = arith.constant 0 : index
    %c0_80 = arith.constant 0 : index
    %c0_81 = arith.constant 0 : index
    %119 = vector.load %arg18[%c0_79, %c0_80, %c0_81] : memref<2x16x256xf32, #tpu.memory_space<vmem>>, vector<1x16x256xf32>
    %120 = vector.shape_cast %119 : vector<1x16x256xf32> to vector<16x256xf32>
    %121 = vector.shape_cast %111 : vector<16x256xf32> to vector<1x16x256xf32>
    tpu.vector_store %arg18[%c0_79, %c0_80, %c0_81], %121 {strides = array<i32>} : memref<2x16x256xf32, #tpu.memory_space<vmem>>, vector<1x16x256xf32>,
    %c1_82 = arith.constant 1 : index
    %c0_83 = arith.constant 0 : index
    %c0_84 = arith.constant 0 : index
    %122 = vector.load %arg2[%c1_82, %c0_83, %c0_84] : memref<2x128x256xf32, #tpu.memory_space<vmem>>, vector<1x128x256xf32>
    %123 = vector.shape_cast %122 : vector<1x128x256xf32> to vector<128x256xf32>
    %cst_85 = arith.constant dense<0.000000e+00> : vector<16x256xf32>
    %124 = tpu.matmul %106, %123, %cst_85 {dimension_numbers = #tpu.dot_dimension_numbers<[1], [0], [0], [1], [0, 0, 1, 1], [], []>} : vector<16x128xf32>, vector<128x256xf32>, vector<16x256xf32> -> vector<16x256xf32>
    %cst_86 = arith.constant dense<0.000000e+00> : vector<16xf32>
    %125 = vector.multi_reduction <add>, %124, %cst_86 [1] : vector<16x256xf32> to vector<16xf32>
    %126 = vector.shape_cast %125 : vector<16xf32> to vector<16x1xf32>
    %127 = arith.addf %114, %126 : vector<16x1xf32>
    %128 = arith.mulf %124, %124 : vector<16x256xf32>
    %cst_87 = arith.constant dense<0.000000e+00> : vector<16xf32>
    %129 = vector.multi_reduction <add>, %128, %cst_87 [1] : vector<16x256xf32> to vector<16xf32>
    %130 = vector.shape_cast %129 : vector<16xf32> to vector<16x1xf32>
    %131 = arith.addf %118, %130 : vector<16x1xf32>
    %c1_88 = arith.constant 1 : index
    %c0_89 = arith.constant 0 : index
    %c0_90 = arith.constant 0 : index
    %132 = vector.load %arg18[%c1_88, %c0_89, %c0_90] : memref<2x16x256xf32, #tpu.memory_space<vmem>>, vector<1x16x256xf32>
    %133 = vector.shape_cast %132 : vector<1x16x256xf32> to vector<16x256xf32>
    %134 = vector.shape_cast %124 : vector<16x256xf32> to vector<1x16x256xf32>
    tpu.vector_store %arg18[%c1_88, %c0_89, %c0_90], %134 {strides = array<i32>} : memref<2x16x256xf32, #tpu.memory_space<vmem>>, vector<1x16x256xf32>,
    %cst_91 = arith.constant 0.001953125 : f32
    %135 = vector.broadcast %cst_91 : f32 to vector<16x1xf32>
    %136 = arith.mulf %127, %135 : vector<16x1xf32>
    %cst_92 = arith.constant 0.001953125 : f32
    %137 = vector.broadcast %cst_92 : f32 to vector<16x1xf32>
    %138 = arith.mulf %131, %137 : vector<16x1xf32>
    %139 = arith.mulf %136, %136 : vector<16x1xf32>
    %140 = arith.subf %138, %139 : vector<16x1xf32>
    %cst_93 = arith.constant 0.000000e+00 : f32
    %141 = vector.broadcast %cst_93 : f32 to vector<16x1xf32>
    %142 = arith.maximumf %140, %141 : vector<16x1xf32>
    %c0_94 = arith.constant 0 : index
    %c0_95 = arith.constant 0 : index
    %143 = vector.load %arg10[%c0_94, %c0_95] : memref<16x1xf32, #tpu.memory_space<vmem>>, vector<16x1xf32>
    %cst_96 = arith.constant 9.99999974E-6 : f32
    %144 = vector.broadcast %cst_96 : f32 to vector<16x1xf32>
    %145 = arith.addf %142, %144 : vector<16x1xf32>
    %146 = math.rsqrt %145 : vector<16x1xf32>
    %147 = arith.mulf %143, %146 : vector<16x1xf32>
    %c0_97 = arith.constant 0 : index
    %c0_98 = arith.constant 0 : index
    %148 = vector.load %arg14[%c0_97, %c0_98] : memref<16x1xf32, #tpu.memory_space<vmem>>, vector<16x1xf32>
    %149 = arith.mulf %136, %147 : vector<16x1xf32>
    %150 = arith.subf %148, %149 : vector<16x1xf32>
    %c0_99 = arith.constant 0 : index
    %c0_100 = arith.constant 0 : index
    %c0_101 = arith.constant 0 : index
    %151 = vector.load %arg18[%c0_99, %c0_100, %c0_101] : memref<2x16x256xf32, #tpu.memory_space<vmem>>, vector<2x16x256xf32>
    %152 = vector.shape_cast %147 : vector<16x1xf32> to vector<1x16x1xf32>
    %153 = vector.broadcast %152 : vector<1x16x1xf32> to vector<2x16x256xf32>
    %154 = arith.mulf %151, %153 : vector<2x16x256xf32>
    %155 = vector.shape_cast %150 : vector<16x1xf32> to vector<1x16x1xf32>
    %156 = vector.broadcast %155 : vector<1x16x1xf32> to vector<2x16x256xf32>
    %157 = arith.addf %154, %156 : vector<2x16x256xf32>
    %c0_102 = arith.constant 0 : index
    %c0_103 = arith.constant 0 : index
    %c0_104 = arith.constant 0 : index
    %158 = vector.load %arg18[%c0_102, %c0_103, %c0_104] : memref<2x16x256xf32, #tpu.memory_space<vmem>>, vector<2x16x256xf32>
    tpu.vector_store %arg18[%c0_102, %c0_103, %c0_104], %157 {strides = array<i32>} : memref<2x16x256xf32, #tpu.memory_space<vmem>>, vector<2x16x256xf32>,
    %c0_105 = arith.constant 0 : index
    %c0_106 = arith.constant 0 : index
    %159 = vector.load %arg7[%c0_105, %c0_106] : memref<8x64xf32, #tpu.memory_space<vmem>>, vector<8x64xf32>
    %cst_107 = arith.constant 0.000000e+00 : f32
    %160 = vector.broadcast %cst_107 : f32 to vector<8x1xf32>
    %cst_108 = arith.constant 0.000000e+00 : f32
    %161 = vector.broadcast %cst_108 : f32 to vector<8x1xf32>
    %c0_109 = arith.constant 0 : index
    %c0_110 = arith.constant 0 : index
    %c0_111 = arith.constant 0 : index
    %162 = vector.load %arg3[%c0_109, %c0_110, %c0_111] : memref<2x64x1024xf32, #tpu.memory_space<vmem>>, vector<1x64x1024xf32>
    %163 = vector.shape_cast %162 : vector<1x64x1024xf32> to vector<64x1024xf32>
    %cst_112 = arith.constant dense<0.000000e+00> : vector<8x1024xf32>
    %164 = tpu.matmul %159, %163, %cst_112 {dimension_numbers = #tpu.dot_dimension_numbers<[1], [0], [0], [1], [0, 0, 1, 1], [], []>} : vector<8x64xf32>, vector<64x1024xf32>, vector<8x1024xf32> -> vector<8x1024xf32>
    %cst_113 = arith.constant dense<0.000000e+00> : vector<8xf32>
    %165 = vector.multi_reduction <add>, %164, %cst_113 [1] : vector<8x1024xf32> to vector<8xf32>
    %166 = vector.shape_cast %165 : vector<8xf32> to vector<8x1xf32>
    %167 = arith.addf %160, %166 : vector<8x1xf32>
    %168 = arith.mulf %164, %164 : vector<8x1024xf32>
    %cst_114 = arith.constant dense<0.000000e+00> : vector<8xf32>
    %169 = vector.multi_reduction <add>, %168, %cst_114 [1] : vector<8x1024xf32> to vector<8xf32>
    %170 = vector.shape_cast %169 : vector<8xf32> to vector<8x1xf32>
    %171 = arith.addf %161, %170 : vector<8x1xf32>
    %c0_115 = arith.constant 0 : index
    %c0_116 = arith.constant 0 : index
    %c0_117 = arith.constant 0 : index
    %172 = vector.load %arg19[%c0_115, %c0_116, %c0_117] : memref<2x8x1024xf32, #tpu.memory_space<vmem>>, vector<1x8x1024xf32>
    %173 = vector.shape_cast %172 : vector<1x8x1024xf32> to vector<8x1024xf32>
    %174 = vector.shape_cast %164 : vector<8x1024xf32> to vector<1x8x1024xf32>
    tpu.vector_store %arg19[%c0_115, %c0_116, %c0_117], %174 {strides = array<i32>} : memref<2x8x1024xf32, #tpu.memory_space<vmem>>, vector<1x8x1024xf32>,
    %c1_118 = arith.constant 1 : index
    %c0_119 = arith.constant 0 : index
    %c0_120 = arith.constant 0 : index
    %175 = vector.load %arg3[%c1_118, %c0_119, %c0_120] : memref<2x64x1024xf32, #tpu.memory_space<vmem>>, vector<1x64x1024xf32>
    %176 = vector.shape_cast %175 : vector<1x64x1024xf32> to vector<64x1024xf32>
    %cst_121 = arith.constant dense<0.000000e+00> : vector<8x1024xf32>
    %177 = tpu.matmul %159, %176, %cst_121 {dimension_numbers = #tpu.dot_dimension_numbers<[1], [0], [0], [1], [0, 0, 1, 1], [], []>} : vector<8x64xf32>, vector<64x1024xf32>, vector<8x1024xf32> -> vector<8x1024xf32>
    %cst_122 = arith.constant dense<0.000000e+00> : vector<8xf32>
    %178 = vector.multi_reduction <add>, %177, %cst_122 [1] : vector<8x1024xf32> to vector<8xf32>
    %179 = vector.shape_cast %178 : vector<8xf32> to vector<8x1xf32>
    %180 = arith.addf %167, %179 : vector<8x1xf32>
    %181 = arith.mulf %177, %177 : vector<8x1024xf32>
    %cst_123 = arith.constant dense<0.000000e+00> : vector<8xf32>
    %182 = vector.multi_reduction <add>, %181, %cst_123 [1] : vector<8x1024xf32> to vector<8xf32>
    %183 = vector.shape_cast %182 : vector<8xf32> to vector<8x1xf32>
    %184 = arith.addf %171, %183 : vector<8x1xf32>
    %c1_124 = arith.constant 1 : index
    %c0_125 = arith.constant 0 : index
    %c0_126 = arith.constant 0 : index
    %185 = vector.load %arg19[%c1_124, %c0_125, %c0_126] : memref<2x8x1024xf32, #tpu.memory_space<vmem>>, vector<1x8x1024xf32>
    %186 = vector.shape_cast %185 : vector<1x8x1024xf32> to vector<8x1024xf32>
    %187 = vector.shape_cast %177 : vector<8x1024xf32> to vector<1x8x1024xf32>
    tpu.vector_store %arg19[%c1_124, %c0_125, %c0_126], %187 {strides = array<i32>} : memref<2x8x1024xf32, #tpu.memory_space<vmem>>, vector<1x8x1024xf32>,
    %cst_127 = arith.constant 4.8828125E-4 : f32
    %188 = vector.broadcast %cst_127 : f32 to vector<8x1xf32>
    %189 = arith.mulf %180, %188 : vector<8x1xf32>
    %cst_128 = arith.constant 4.8828125E-4 : f32
    %190 = vector.broadcast %cst_128 : f32 to vector<8x1xf32>
    %191 = arith.mulf %184, %190 : vector<8x1xf32>
    %192 = arith.mulf %189, %189 : vector<8x1xf32>
    %193 = arith.subf %191, %192 : vector<8x1xf32>
    %cst_129 = arith.constant 0.000000e+00 : f32
    %194 = vector.broadcast %cst_129 : f32 to vector<8x1xf32>
    %195 = arith.maximumf %193, %194 : vector<8x1xf32>
    %c0_130 = arith.constant 0 : index
    %c0_131 = arith.constant 0 : index
    %196 = vector.load %arg11[%c0_130, %c0_131] : memref<8x1xf32, #tpu.memory_space<vmem>>, vector<8x1xf32>
    %cst_132 = arith.constant 9.99999974E-6 : f32
    %197 = vector.broadcast %cst_132 : f32 to vector<8x1xf32>
    %198 = arith.addf %195, %197 : vector<8x1xf32>
    %199 = math.rsqrt %198 : vector<8x1xf32>
    %200 = arith.mulf %196, %199 : vector<8x1xf32>
    %c0_133 = arith.constant 0 : index
    %c0_134 = arith.constant 0 : index
    %201 = vector.load %arg15[%c0_133, %c0_134] : memref<8x1xf32, #tpu.memory_space<vmem>>, vector<8x1xf32>
    %202 = arith.mulf %189, %200 : vector<8x1xf32>
    %203 = arith.subf %201, %202 : vector<8x1xf32>
    %c0_135 = arith.constant 0 : index
    %c0_136 = arith.constant 0 : index
    %c0_137 = arith.constant 0 : index
    %204 = vector.load %arg19[%c0_135, %c0_136, %c0_137] : memref<2x8x1024xf32, #tpu.memory_space<vmem>>, vector<2x8x1024xf32>
    %205 = vector.shape_cast %200 : vector<8x1xf32> to vector<1x8x1xf32>
    %206 = vector.broadcast %205 : vector<1x8x1xf32> to vector<2x8x1024xf32>
    %207 = arith.mulf %204, %206 : vector<2x8x1024xf32>
    %208 = vector.shape_cast %203 : vector<8x1xf32> to vector<1x8x1xf32>
    %209 = vector.broadcast %208 : vector<1x8x1xf32> to vector<2x8x1024xf32>
    %210 = arith.addf %207, %209 : vector<2x8x1024xf32>
    %c0_138 = arith.constant 0 : index
    %c0_139 = arith.constant 0 : index
    %c0_140 = arith.constant 0 : index
    %211 = vector.load %arg19[%c0_138, %c0_139, %c0_140] : memref<2x8x1024xf32, #tpu.memory_space<vmem>>, vector<2x8x1024xf32>
    tpu.vector_store %arg19[%c0_138, %c0_139, %c0_140], %210 {strides = array<i32>} : memref<2x8x1024xf32, #tpu.memory_space<vmem>>, vector<2x8x1024xf32>,
    return
  }
}

</mosaic_0001>

<bundles_post_ra>
// kernel: _forward_impl.1
= control target key start
LH: loop header
LB: loop body
LE: loop exit
PB: predicated region body
PF: predicated region fallthrough
CT: control target
= control target key end

     0   :  { %vm869_vm0 = vcmask 523264   ;;  %vm307_vm1 = vcmask 130048   ;;  %s5249_s0 = inlined_call_operand.vmem [shape: f32[2,512,16], index: 0, kind: input, shape index: {}]   ;;  %s5250_s4 = inlined_call_operand.vmem [shape: f32[32,512], index: 4, kind: input, shape index: {}]   ;;  %s5251_s1 = inlined_call_operand.vmem [shape: f32[2,256,64], index: 1, kind: input, shape index: {}]   ;;  %s5252_s5 = inlined_call_operand.vmem [shape: f32[32,256], index: 5, kind: input, shape index: {}]   ;;  %s5253_s2 = inlined_call_operand.vmem [shape: f32[2,128,256], index: 2, kind: input, shape index: {}]   ;;  %s5254_s3 = inlined_call_operand.vmem [shape: f32[2,64,1024], index: 3, kind: input, shape index: {}]   ;;  %s5255_s6 = inlined_call_operand.vmem [shape: f32[16,128], index: 6, kind: input, shape index: {}]   ;;  %s5256_s7 = inlined_call_operand.vmem [shape: f32[8,64], index: 7, kind: input, shape index: {}]   ;;  %s5257_s16 = inlined_call_operand.vmem [shape: f32[2,32,16], index: 16, kind: output, shape index: {0}]   ;;  %s5258_s17 = inlined_call_operand.vmem [shape: f32[2,32,64], index: 17, kind: output, shape index: {1}]   ;;  %s5259_s8 = inlined_call_operand.vmem [shape: f32[32,1], index: 8, kind: input, shape index: {}]   ;;  %s5260_s12 = inlined_call_operand.vmem [shape: f32[32,1], index: 12, kind: input, shape index: {}]   ;;  %s5261_s9 = inlined_call_operand.vmem [shape: f32[32,1], index: 9, kind: input, shape index: {}]   ;;  %s5262_s13 = inlined_call_operand.vmem [shape: f32[32,1], index: 13, kind: input, shape index: {}]   ;;  %s5263_s10 = inlined_call_operand.vmem [shape: f32[16,1], index: 10, kind: input, shape index: {}]   ;;  %s5264_s14 = inlined_call_operand.vmem [shape: f32[16,1], index: 14, kind: input, shape index: {}]   ;;  %s5265_s11 = inlined_call_operand.vmem [shape: f32[8,1], index: 11, kind: input, shape index: {}]   ;;  %s5266_s15 = inlined_call_operand.vmem [shape: f32[8,1], index: 15, kind: input, shape index: {}]   ;;  %s5267_s18 = inlined_call_operand.vmem [shape: f32[2,16,256], index: 18, kind: output, shape index: {2}]   ;;  %s5268_s19 = inlined_call_operand.vmem [shape: f32[2,8,1024], index: 19, kind: output, shape index: {3}]  }
   0x1   :  { %5273 = sst [smem:[#allocation2_spill]] %s5249_s0 }
   0x2   :  { %5274 = sst [smem:[#allocation3_spill]] %s5250_s4  ;;  %s5277_s20 = sld [smem:[#allocation2_spill]] }
   0x3   :  { %5275 = sst [smem:[#allocation4_spill]] %s5251_s1  ;;  %s5278_s0 = sld [smem:[#allocation3_spill]] }
   0x4   :  { %5276 = sst [smem:[#allocation5_spill]] %s5252_s5  ;;  %s5279_s23 = sld [smem:[#allocation4_spill]] }
   0x5   :  { %s5280_s27 = sld [smem:[#allocation5_spill]] }
   0x8   :  { %v89_v0 = vld [vmem:[%s5277_s20 + $0x80] sm:$0xff]  ;;  %v90_v1 = vld [vmem:[%s5277_s20 + $0x88] sm:$0xff]  ;;  %v91_v11 = vld [vmem:[%s5277_s20 + $0x90] sm:$0xff] }
   0x9   :  { %v121_v2 = vld [vmem:[%s5277_s20 + $0x180] sm:$0xff]  ;;  %v2895_v3 = vpack.c.bf16 %v90_v1, %v89_v0  ;;  %v122_v4 = vld [vmem:[%s5277_s20 + $0x188] sm:$0xff]  ;;  %v92_v13 = vld [vmem:[%s5277_s20 + $0x98] sm:$0xff] }
   0xa   :  { %v73_v5 = vld [vmem:[%s5277_s20] sm:$0xff]  ;;  %v74_v6 = vld [vmem:[%s5277_s20 + $0x8] sm:$0xff]  ;;  %v2927_v7 = vpack.c.bf16 %v122_v4, %v121_v2  ;;  %v123_v14 = vld [vmem:[%s5277_s20 + $0x190] sm:$0xff]  ;;  %v2899_v16 = vpack.c.bf16 %v92_v13, %v91_v11 }
   0xb   :  { %v2897_v8 = vpack.c.bf16 %v74_v6, %v73_v5  ;;  %v105_v9 = vld [vmem:[%s5277_s20 + $0x100] sm:$0xff]  ;;  %v106_v10 = vld [vmem:[%s5277_s20 + $0x108] sm:$0xff]  ;;  %2896 = vmatprep.subr.bf16.mxu0 %v2895_v3  ;;  %v124_v15 = vld [vmem:[%s5277_s20 + $0x198] sm:$0xff] }
   0xc   :  { %v2929_v12 = vpack.c.bf16 %v106_v10, %v105_v9  ;;  %2928 = vmatprep.subr.bf16.mxu1 %v2927_v7  ;;  %v2931_v17 = vpack.c.bf16 %v124_v15, %v123_v14  ;;  %v75_v18 = vld [vmem:[%s5277_s20 + $0x10] sm:$0xff]  ;;  %v76_v19 = vld [vmem:[%s5277_s20 + $0x18] sm:$0xff]  ;;  %v93_v23 = vld [vmem:[%s5277_s20 + $0xa0] sm:$0xff] }
   0xd   :  { %2898 = vmatpush3.bf16.msra.mxu0 %v2897_v8  ;;  %v107_v20 = vld [vmem:[%s5277_s20 + $0x110] sm:$0xff]  ;;  %v2901_v21 = vpack.c.bf16 %v76_v19, %v75_v18  ;;  %v108_v22 = vld [vmem:[%s5277_s20 + $0x118] sm:$0xff]  ;;  %v94_v24 = vld [vmem:[%s5277_s20 + $0xa8] sm:$0xff] }
   0xe   :  { %2930 = vmatpush3.bf16.msra.mxu1 %v2929_v12  ;;  %2900 = vmatprep.subr.bf16.mxu0 %v2899_v16  ;;  %v2933_v25 = vpack.c.bf16 %v108_v22, %v107_v20  ;;  %v2903_v26 = vpack.c.bf16 %v94_v24, %v93_v23  ;;  %v125_v27 = vld [vmem:[%s5277_s20 + $0x1a0] sm:$0xff]  ;;  %v126_v28 = vld [vmem:[%s5277_s20 + $0x1a8] sm:$0xff]  ;;  %v95_v35 = vld [vmem:[%s5277_s20 + $0xb0] sm:$0xff] }
   0xf   :  { %2932 = vmatprep.subr.bf16.mxu1 %v2931_v17  ;;  %v77_v29 = vld [vmem:[%s5277_s20 + $0x20] sm:$0xff]  ;;  %v2935_v30 = vpack.c.bf16 %v126_v28, %v125_v27  ;;  %v78_v31 = vld [vmem:[%s5277_s20 + $0x28] sm:$0xff]  ;;  %v96_v36 = vld [vmem:[%s5277_s20 + $0xb8] sm:$0xff] }
  0x10   :  { %v109_v32 = vld [vmem:[%s5277_s20 + $0x120] sm:$0xff]  ;;  %v110_v33 = vld [vmem:[%s5277_s20 + $0x128] sm:$0xff]  ;;  %v2905_v34 = vpack.c.bf16 %v78_v31, %v77_v29  ;;  %v127_v37 = vld [vmem:[%s5277_s20 + $0x1b0] sm:$0xff]  ;;  %v2907_v39 = vpack.c.bf16 %v96_v36, %v95_v35 }
  0x11   :  { %2902 = vmatpush3.bf16.msra.mxu0 %v2901_v21  ;;  %v2937_v38 = vpack.c.bf16 %v110_v33, %v109_v32  ;;  %v128_v40 = vld [vmem:[%s5277_s20 + $0x1b8] sm:$0xff]  ;;  %v79_v41 = vld [vmem:[%s5277_s20 + $0x30] sm:$0xff]  ;;  %v97_v46 = vld [vmem:[%s5277_s20 + $0xc0] sm:$0xff] }
  0x12   :  { %2934 = vmatpush3.bf16.msra.mxu1 %v2933_v25  ;;  %2904 = vmatprep.subr.bf16.mxu0 %v2903_v26  ;;  %v80_v42 = vld [vmem:[%s5277_s20 + $0x38] sm:$0xff]  ;;  %v2939_v43 = vpack.c.bf16 %v128_v40, %v127_v37  ;;  %v111_v44 = vld [vmem:[%s5277_s20 + $0x130] sm:$0xff]  ;;  %v98_v47 = vld [vmem:[%s5277_s20 + $0xc8] sm:$0xff] }
  0x13   :  { %2936 = vmatprep.subr.bf16.mxu1 %v2935_v30  ;;  %v112_v45 = vld [vmem:[%s5277_s20 + $0x138] sm:$0xff]  ;;  %v129_v48 = vld [vmem:[%s5277_s20 + $0x1c0] sm:$0xff]  ;;  %v130_v49 = vld [vmem:[%s5277_s20 + $0x1c8] sm:$0xff]  ;;  %v2909_v50 = vpack.c.bf16 %v80_v42, %v79_v41  ;;  %v2911_v52 = vpack.c.bf16 %v98_v47, %v97_v46 }
  0x14   :  { %v2941_v51 = vpack.c.bf16 %v112_v45, %v111_v44  ;;  %v81_v53 = vld [vmem:[%s5277_s20 + $0x40] sm:$0xff]  ;;  %v82_v54 = vld [vmem:[%s5277_s20 + $0x48] sm:$0xff]  ;;  %v2943_v56 = vpack.c.bf16 %v130_v49, %v129_v48  ;;  %v99_v58 = vld [vmem:[%s5277_s20 + $0xd0] sm:$0xff] }
  0x15   :  { %2906 = vmatpush3.bf16.msra.mxu0 %v2905_v34  ;;  %v113_v55 = vld [vmem:[%s5277_s20 + $0x140] sm:$0xff]  ;;  %v114_v57 = vld [vmem:[%s5277_s20 + $0x148] sm:$0xff]  ;;  %v100_v59 = vld [vmem:[%s5277_s20 + $0xd8] sm:$0xff]  ;;  %v2913_v62 = vpack.c.bf16 %v82_v54, %v81_v53 }
  0x16   :  { %2938 = vmatpush3.bf16.msra.mxu1 %v2937_v38  ;;  %2908 = vmatprep.subr.bf16.mxu0 %v2907_v39  ;;  %v131_v60 = vld [vmem:[%s5277_s20 + $0x1d0] sm:$0xff]  ;;  %v132_v61 = vld [vmem:[%s5277_s20 + $0x1d8] sm:$0xff]  ;;  %v2945_v63 = vpack.c.bf16 %v114_v57, %v113_v55  ;;  %v2915_v0 = vpack.c.bf16 %v100_v59, %v99_v58  ;;  %v101_v6 = vld [vmem:[%s5277_s20 + $0xe0] sm:$0xff] }
  0x17   :  { %2940 = vmatprep.subr.bf16.mxu1 %v2939_v43  ;;  %v83_v1 = vld [vmem:[%s5277_s20 + $0x50] sm:$0xff]  ;;  %v84_v2 = vld [vmem:[%s5277_s20 + $0x58] sm:$0xff]  ;;  %v2947_v4 = vpack.c.bf16 %v132_v61, %v131_v60  ;;  %v102_v7 = vld [vmem:[%s5277_s20 + $0xe8] sm:$0xff] }
  0x18   :  { %v115_v3 = vld [vmem:[%s5277_s20 + $0x150] sm:$0xff]  ;;  %v116_v5 = vld [vmem:[%s5277_s20 + $0x158] sm:$0xff]  ;;  %v133_v8 = vld [vmem:[%s5277_s20 + $0x1e0] sm:$0xff]  ;;  %v2917_v10 = vpack.c.bf16 %v84_v2, %v83_v1  ;;  %v2919_v14 = vpack.c.bf16 %v102_v7, %v101_v6 }
  0x19   :  { %2910 = vmatpush3.bf16.msra.mxu0 %v2909_v50  ;;  %v134_v9 = vld [vmem:[%s5277_s20 + $0x1e8] sm:$0xff]  ;;  %v85_v11 = vld [vmem:[%s5277_s20 + $0x60] sm:$0xff]  ;;  %v2949_v13 = vpack.c.bf16 %v116_v5, %v115_v3  ;;  %v3580_v17 = vld [vmem:[%s5278_s0 + $0x18] sm:$0xff] }
  0x1a   :  { %2942 = vmatpush3.bf16.msra.mxu1 %v2941_v51  ;;  %2912 = vmatprep.subr.bf16.mxu0 %v2911_v52  ;;  %v86_v12 = vld [vmem:[%s5277_s20 + $0x68] sm:$0xff]  ;;  %v117_v15 = vld [vmem:[%s5277_s20 + $0x160] sm:$0xff]  ;;  %v2951_v18 = vpack.c.bf16 %v134_v9, %v133_v8  ;;  %v103_v20 = vld [vmem:[%s5277_s20 + $0xf0] sm:$0xff] }
  0x1b   :  { %2944 = vmatprep.subr.bf16.mxu1 %v2943_v56  ;;  %v3575_v16 = vld [vmem:[%s5278_s0 + $0x8] sm:$0xff]  ;;  %v104_v21 = vld [vmem:[%s5277_s20 + $0xf8] sm:$0xff]  ;;  %v135_v22 = vld [vmem:[%s5277_s20 + $0x1f0] sm:$0xff]  ;;  %286 = vmatprep.mubr.f32.mxu1 %v3580_v17  ;;  %v2921_v24 = vpack.c.bf16 %v86_v12, %v85_v11 }
  0x1c   :  { %v118_v19 = vld [vmem:[%s5277_s20 + $0x168] sm:$0xff]  ;;  %201 = vmatprep.mubr.f32.mxu0 %v3575_v16  ;;  %v136_v23 = vld [vmem:[%s5277_s20 + $0x1f8] sm:$0xff]  ;;  %v2923_v26 = vpack.c.bf16 %v104_v21, %v103_v20  ;;  %v87_v27 = vld [vmem:[%s5277_s20 + $0x70] sm:$0xff] }
  0x1d   :  { %2914 = vmatpush3.bf16.msra.mxu0 %v2913_v62  ;;  %v2953_v25 = vpack.c.bf16 %v118_v19, %v117_v15  ;;  %v88_v28 = vld [vmem:[%s5277_s20 + $0x78] sm:$0xff]  ;;  %v119_v29 = vld [vmem:[%s5277_s20 + $0x170] sm:$0xff]  ;;  %v2955_v30 = vpack.c.bf16 %v136_v23, %v135_v22  ;;  %v2427_v32 = vld [vmem:[%s5277_s20 + $0x280] sm:$0xff] }
  0x1e   :  { %2946 = vmatpush3.bf16.msra.mxu1 %v2945_v63  ;;  %2916 = vmatprep.subr.bf16.mxu0 %v2915_v0  ;;  %v120_v31 = vld [vmem:[%s5277_s20 + $0x178] sm:$0xff]  ;;  %v2428_v33 = vld [vmem:[%s5277_s20 + $0x288] sm:$0xff]  ;;  %v2459_v34 = vld [vmem:[%s5277_s20 + $0x380] sm:$0xff]  ;;  %v2925_v36 = vpack.c.bf16 %v88_v28, %v87_v27 }
  0x1f   :  { %2948 = vmatprep.subr.bf16.mxu1 %v2947_v4  ;;  %v2460_v35 = vld [vmem:[%s5277_s20 + $0x388] sm:$0xff]  ;;  %v2957_v37 = vpack.c.bf16 %v120_v31, %v119_v29  ;;  %v2959_v38 = vpack.c.bf16 %v2428_v33, %v2427_v32  ;;  %v2411_v39 = vld [vmem:[%s5277_s20 + $0x200] sm:$0xff]  ;;  %v2429_v44 = vld [vmem:[%s5277_s20 + $0x290] sm:$0xff] }
  0x20   :  { %v2412_v40 = vld [vmem:[%s5277_s20 + $0x208] sm:$0xff]  ;;  %v2443_v41 = vld [vmem:[%s5277_s20 + $0x300] sm:$0xff]  ;;  %v2991_v42 = vpack.c.bf16 %v2460_v35, %v2459_v34  ;;  %v2430_v45 = vld [vmem:[%s5277_s20 + $0x298] sm:$0xff] }
  0x21   :  { %2918 = vmatpush3.bf16.msra.mxu0 %v2917_v10  ;;  %v2444_v43 = vld [vmem:[%s5277_s20 + $0x308] sm:$0xff]  ;;  %v2461_v46 = vld [vmem:[%s5277_s20 + $0x390] sm:$0xff]  ;;  %v2462_v47 = vld [vmem:[%s5277_s20 + $0x398] sm:$0xff]  ;;  %v2961_v50 = vpack.c.bf16 %v2412_v40, %v2411_v39  ;;  %v2963_v52 = vpack.c.bf16 %v2430_v45, %v2429_v44 }
  0x22   :  { %2950 = vmatpush3.bf16.msra.mxu1 %v2949_v13  ;;  %2920 = vmatprep.subr.bf16.mxu0 %v2919_v14  ;;  %v3650_v48 = vld [vmem:[%s5278_s0] sm:$0xff]  ;;  %v3655_v49 = vld [vmem:[%s5278_s0 + $0x10] sm:$0xff]  ;;  %v2993_v51 = vpack.c.bf16 %v2444_v43, %v2443_v41  ;;  %v2414_v54 = vld [vmem:[%s5277_s20 + $0x218] sm:$0xff]  ;;  %v2995_v56 = vpack.c.bf16 %v2462_v47, %v2461_v46 }
  0x23   :  { %2952 = vmatprep.subr.bf16.mxu1 %v2951_v18  ;;  %v2413_v53 = vld [vmem:[%s5277_s20 + $0x210] sm:$0xff]  ;;  %v2446_v57 = vld [vmem:[%s5277_s20 + $0x318] sm:$0xff]  ;;  %v2431_v58 = vld [vmem:[%s5277_s20 + $0x2a0] sm:$0xff] }
  0x24   :  { %v2445_v55 = vld [vmem:[%s5277_s20 + $0x310] sm:$0xff]  ;;  %v2432_v59 = vld [vmem:[%s5277_s20 + $0x2a8] sm:$0xff]  ;;  %v2463_v60 = vld [vmem:[%s5277_s20 + $0x3a0] sm:$0xff]  ;;  %v2965_v63 = vpack.c.bf16 %v2414_v54, %v2413_v53 }
  0x25   :  { %2922 = vmatpush3.bf16.msra.mxu0 %v2921_v24  ;;  %v2464_v61 = vld [vmem:[%s5277_s20 + $0x3a8] sm:$0xff]  ;;  %v2415_v0 = vld [vmem:[%s5277_s20 + $0x220] sm:$0xff]  ;;  %v3694_v1 = vld [vmem:[%s5278_s0 + $0x38] sm:$0xff]  ;;  %v2997_v3 = vpack.c.bf16 %v2446_v57, %v2445_v55  ;;  %v2967_v4 = vpack.c.bf16 %v2432_v59, %v2431_v58 }
  0x26   :  { %2954 = vmatpush3.bf16.msra.mxu1 %v2953_v25  ;;  %2924 = vmatprep.subr.bf16.mxu0 %v2923_v26  ;;  %v3685_v62 = vld [vmem:[%s5278_s0 + $0x28] sm:$0xff]  ;;  %v3699_v2 = vld [vmem:[%s5278_s0 + $0x20] sm:$0xff]  ;;  %v3710_v7 = vld [vmem:[%s5278_s0 + $0x30] sm:$0xff]  ;;  %v2999_v8 = vpack.c.bf16 %v2464_v61, %v2463_v60 }
  0x27   :  { %2956 = vmatprep.subr.bf16.mxu1 %v2955_v30  ;;  %v2416_v5 = vld [vmem:[%s5277_s20 + $0x228] sm:$0xff]  ;;  %v2447_v6 = vld [vmem:[%s5277_s20 + $0x320] sm:$0xff]  ;;  %v2433_v10 = vld [vmem:[%s5277_s20 + $0x2b0] sm:$0xff] }
  0x28   :  { %v2448_v9 = vld [vmem:[%s5277_s20 + $0x328] sm:$0xff]  ;;  %v2434_v11 = vld [vmem:[%s5277_s20 + $0x2b8] sm:$0xff]  ;;  %v2465_v12 = vld [vmem:[%s5277_s20 + $0x3b0] sm:$0xff]  ;;  %v2969_v15 = vpack.c.bf16 %v2416_v5, %v2415_v0 }
  0x29   :  { %2926 = vmatpush3.bf16.msra.mxu0 %v2925_v36  ;;  %v2466_v13 = vld [vmem:[%s5277_s20 + $0x3b8] sm:$0xff]  ;;  %v3733_v14 = vld [vmem:[%s5278_s0 + $0x48] sm:$0xff]  ;;  %v2417_v18 = vld [vmem:[%s5277_s20 + $0x230] sm:$0xff]  ;;  %v3001_v21 = vpack.c.bf16 %v2448_v9, %v2447_v6  ;;  %v2971_v22 = vpack.c.bf16 %v2434_v11, %v2433_v10 }
  0x2a   :  { %2958 = vmatpush3.bf16.msra.mxu1 %v2957_v37  ;;  %2960 = vmatprep.subr.bf16.mxu0 %v2959_v38  ;;  %v3742_v19 = vld [vmem:[%s5278_s0 + $0x58] sm:$0xff]  ;;  %v3747_v20 = vld [vmem:[%s5278_s0 + $0x40] sm:$0xff]  ;;  %v2449_v24 = vld [vmem:[%s5277_s20 + $0x330] sm:$0xff]  ;;  %v3003_v26 = vpack.c.bf16 %v2466_v13, %v2465_v12 }
  0x2b   :  { %2992 = vmatprep.subr.bf16.mxu1 %v2991_v42  ;;  %v2418_v23 = vld [vmem:[%s5277_s20 + $0x238] sm:$0xff]  ;;  %v3758_v25 = vld [vmem:[%s5278_s0 + $0x50] sm:$0xff]  ;;  %v2435_v28 = vld [vmem:[%s5277_s20 + $0x2c0] sm:$0xff] }
  0x2c   :  { %202 = vmatmul.mubr.f32.vlgmr.msra.gmra.mrb[0].mxu0 %v3650_v48  ;;  %v2450_v27 = vld [vmem:[%s5277_s20 + $0x338] sm:$0xff]  ;;  %v2436_v29 = vld [vmem:[%s5277_s20 + $0x2c8] sm:$0xff]  ;;  %v2467_v30 = vld [vmem:[%s5277_s20 + $0x3c0] sm:$0xff]  ;;  %v2973_v33 = vpack.c.bf16 %v2418_v23, %v2417_v18 }
  0x2d   :  { %287 = vmatmul.mubr.f32.vlgmr.msra.gmra.mrb[0].mxu1 %v3655_v49  ;;  %2962 = vmatpush3.bf16.msra.mxu0 %v2961_v50  ;;  %v2468_v31 = vld [vmem:[%s5277_s20 + $0x3c8] sm:$0xff]  ;;  %v2419_v34 = vld [vmem:[%s5277_s20 + $0x240] sm:$0xff]  ;;  %v3790_v35 = vld [vmem:[%s5278_s0 + $0x78] sm:$0xff]  ;;  %v3005_v37 = vpack.c.bf16 %v2450_v27, %v2449_v24  ;;  %v2975_v38 = vpack.c.bf16 %v2436_v29, %v2435_v28 }
  0x2e   :  { %2994 = vmatpush3.bf16.msra.mxu1 %v2993_v51  ;;  %2964 = vmatprep.subr.bf16.mxu0 %v2963_v52  ;;  %v3781_v32 = vld [vmem:[%s5278_s0 + $0x68] sm:$0xff]  ;;  %v3795_v36 = vld [vmem:[%s5278_s0 + $0x60] sm:$0xff]  ;;  %v3806_v41 = vld [vmem:[%s5278_s0 + $0x70] sm:$0xff]  ;;  %v3007_v42 = vpack.c.bf16 %v2468_v31, %v2467_v30 }
  0x2f   :  { %2996 = vmatprep.subr.bf16.mxu1 %v2995_v56  ;;  %206 = vmatprep.mubr.f32.mxu0 %v3685_v62  ;;  %v2420_v39 = vld [vmem:[%s5277_s20 + $0x248] sm:$0xff]  ;;  %v2451_v40 = vld [vmem:[%s5277_s20 + $0x340] sm:$0xff]  ;;  %v2437_v44 = vld [vmem:[%s5277_s20 + $0x2d0] sm:$0xff] }
  0x30   :  { %291 = vmatprep.mubr.f32.mxu1 %v3694_v1  ;;  %207 = vmatmul.mubr.f32.gmra.mrb[2].mxu0 %v3699_v2  ;;  %v2452_v43 = vld [vmem:[%s5277_s20 + $0x348] sm:$0xff]  ;;  %v2438_v45 = vld [vmem:[%s5277_s20 + $0x2d8] sm:$0xff]  ;;  %v2469_v46 = vld [vmem:[%s5277_s20 + $0x3d0] sm:$0xff]  ;;  %v2977_v50 = vpack.c.bf16 %v2420_v39, %v2419_v34 }
  0x31   :  { %2966 = vmatpush3.bf16.msra.mxu0 %v2965_v63  ;;  %292 = vmatmul.mubr.f32.gmra.mrb[2].mxu1 %v3710_v7  ;;  %v2470_v47 = vld [vmem:[%s5277_s20 + $0x3d8] sm:$0xff]  ;;  %v3009_v51 = vpack.c.bf16 %v2452_v43, %v2451_v40  ;;  %v2979_v52 = vpack.c.bf16 %v2438_v45, %v2437_v44  ;;  %v2421_v53 = vld [vmem:[%s5277_s20 + $0x250] sm:$0xff]  ;;  %v2439_v58 = vld [vmem:[%s5277_s20 + $0x2e0] sm:$0xff] }
  0x32   :  { %2998 = vmatpush3.bf16.msra.mxu1 %v2997_v3  ;;  %2968 = vmatprep.subr.bf16.mxu0 %v2967_v4  ;;  %v2422_v54 = vld [vmem:[%s5277_s20 + $0x258] sm:$0xff]  ;;  %v2453_v55 = vld [vmem:[%s5277_s20 + $0x350] sm:$0xff]  ;;  %v3011_v56 = vpack.c.bf16 %v2470_v47, %v2469_v46  ;;  %v2440_v59 = vld [vmem:[%s5277_s20 + $0x2e8] sm:$0xff] }
  0x33   :  { %3000 = vmatprep.subr.bf16.mxu1 %v2999_v8  ;;  %211 = vmatprep.mubr.f32.mxu0 %v3733_v14  ;;  %v2454_v57 = vld [vmem:[%s5277_s20 + $0x358] sm:$0xff]  ;;  %v2471_v60 = vld [vmem:[%s5277_s20 + $0x3e0] sm:$0xff]  ;;  %v2472_v61 = vld [vmem:[%s5277_s20 + $0x3e8] sm:$0xff]  ;;  %v2981_v63 = vpack.c.bf16 %v2422_v54, %v2421_v53  ;;  %v2983_v3 = vpack.c.bf16 %v2440_v59, %v2439_v58 }
  0x34   :  { %296 = vmatprep.mubr.f32.mxu1 %v3742_v19  ;;  %212 = vmatmul.mubr.f32.gmra.mrb[4].mxu0 %v3747_v20  ;;  %v3013_v0 = vpack.c.bf16 %v2454_v57, %v2453_v55  ;;  %v2424_v4 = vld [vmem:[%s5277_s20 + $0x268] sm:$0xff]  ;;  %v2455_v5 = vld [vmem:[%s5277_s20 + $0x360] sm:$0xff]  ;;  %v2441_v8 = vld [vmem:[%s5277_s20 + $0x2f0] sm:$0xff] }
  0x35   :  { %2970 = vmatpush3.bf16.msra.mxu0 %v2969_v15  ;;  %297 = vmatmul.mubr.f32.gmra.mrb[4].mxu1 %v3758_v25  ;;  %v2456_v6 = vld [vmem:[%s5277_s20 + $0x368] sm:$0xff]  ;;  %v2442_v9 = vld [vmem:[%s5277_s20 + $0x2f8] sm:$0xff]  ;;  %v2473_v10 = vld [vmem:[%s5277_s20 + $0x3f0] sm:$0xff] }
  0x36   :  { %3002 = vmatpush3.bf16.msra.mxu1 %v3001_v21  ;;  %2972 = vmatprep.subr.bf16.mxu0 %v2971_v22  ;;  %v2474_v11 = vld [vmem:[%s5277_s20 + $0x3f8] sm:$0xff]  ;;  %v3017_v13 = vpack.c.bf16 %v2456_v6, %v2455_v5  ;;  %v2987_v15 = vpack.c.bf16 %v2442_v9, %v2441_v8  ;;  %v2425_v18 = vld [vmem:[%s5277_s20 + $0x270] sm:$0xff]  ;;  %v769_v27 = vld [vmem:[%s5279_s23 + $0x88] sm:$0xff] }
  0x37   :  { %3004 = vmatprep.subr.bf16.mxu1 %v3003_v26  ;;  %216 = vmatprep.mubr.f32.mxu0 %v3781_v32  ;;  %v2426_v21 = vld [vmem:[%s5277_s20 + $0x278] sm:$0xff]  ;;  %v2457_v22 = vld [vmem:[%s5277_s20 + $0x370] sm:$0xff]  ;;  %v3019_v23 = vpack.c.bf16 %v2474_v11, %v2473_v10  ;;  %v768_v26 = vld [vmem:[%s5279_s23 + $0x80] sm:$0xff] }
  0x38   :  { %301 = vmatprep.mubr.f32.mxu1 %v3790_v35  ;;  %217 = vmatmul.mubr.f32.gmra.mrb[6].mxu0 %v3795_v36  ;;  %v2458_v24 = vld [vmem:[%s5277_s20 + $0x378] sm:$0xff]  ;;  %v2495_v28 = vld [vmem:[%s5279_s23 + $0x180] sm:$0xff]  ;;  %v2496_v29 = vld [vmem:[%s5279_s23 + $0x188] sm:$0xff]  ;;  %v2989_v30 = vpack.c.bf16 %v2426_v21, %v2425_v18 }
  0x39   :  { %2974 = vmatpush3.bf16.msra.mxu0 %v2973_v33  ;;  %302 = vmatmul.mubr.f32.gmra.mrb[6].mxu1 %v3806_v41  ;;  %v3021_v31 = vpack.c.bf16 %v2458_v24, %v2457_v22  ;;  %v3023_v33 = vpack.c.bf16 %v769_v27, %v768_v26  ;;  %v752_v34 = vld [vmem:[%s5279_s23] sm:$0xff]  ;;  %v2480_v40 = vld [vmem:[%s5279_s23 + $0x108] sm:$0xff]  ;;  %v771_v43 = vld [vmem:[%s5279_s23 + $0x98] sm:$0xff] }
  0x3a   :  { %3006 = vmatpush3.bf16.msra.mxu1 %v3005_v37  ;;  %2976 = vmatprep.subr.bf16.mxu0 %v2975_v38  ;;  %v753_v37 = vld [vmem:[%s5279_s23 + $0x8] sm:$0xff]  ;;  %v3055_v38 = vpack.c.bf16 %v2496_v29, %v2495_v28  ;;  %v2479_v39 = vld [vmem:[%s5279_s23 + $0x100] sm:$0xff]  ;;  %v2497_v45 = vld [vmem:[%s5279_s23 + $0x190] sm:$0xff] }
  0x3b   :  { %3008 = vmatprep.subr.bf16.mxu1 %v3007_v42  ;;  %477 = vmatprep.mubr.f32.mxu0 %v3575_v16  ;;  %v2423_v16 = vld [vmem:[%s5277_s20 + $0x260] sm:$0xff]  ;;  %v770_v42 = vld [vmem:[%s5279_s23 + $0x90] sm:$0xff]  ;;  %v3025_v44 = vpack.c.bf16 %v753_v37, %v752_v34  ;;  %v2498_v46 = vld [vmem:[%s5279_s23 + $0x198] sm:$0xff]  ;;  %v3057_v47 = vpack.c.bf16 %v2480_v40, %v2479_v39 }
  0x3c   :  { %562 = vmatprep.mubr.f32.mxu1 %v3580_v17  ;;  %v3015_v17 = vpack.c.bf16 %v2472_v61, %v2471_v60  ;;  %v2985_v12 = vpack.c.bf16 %v2424_v4, %v2423_v16  ;;  %v2481_v53 = vld [vmem:[%s5279_s23 + $0x110] sm:$0xff]  ;;  %v2482_v54 = vld [vmem:[%s5279_s23 + $0x118] sm:$0xff]  ;;  %v3059_v55 = vpack.c.bf16 %v2498_v46, %v2497_v45  ;;  %v773_v57 = vld [vmem:[%s5279_s23 + $0xa8] sm:$0xff] }
  0x3d   :  { %2978 = vmatpush3.bf16.msra.mxu0 %v2977_v50  ;;  %v754_v50 = vld [vmem:[%s5279_s23 + $0x10] sm:$0xff]  ;;  %v2499_v59 = vld [vmem:[%s5279_s23 + $0x1a0] sm:$0xff]  ;;  %v3061_v60 = vpack.c.bf16 %v2482_v54, %v2481_v53  ;;  %v777_v11 = vld [vmem:[%s5279_s23 + $0xc8] sm:$0xff] }
  0x3e   :  { %3010 = vmatpush3.bf16.msra.mxu1 %v3009_v51  ;;  %2980 = vmatprep.subr.bf16.mxu0 %v2979_v52  ;;  %v755_v51 = vld [vmem:[%s5279_s23 + $0x18] sm:$0xff]  ;;  %v3027_v52 = vpack.c.bf16 %v771_v43, %v770_v42  ;;  %v756_v61 = vld [vmem:[%s5279_s23 + $0x20] sm:$0xff]  ;;  %v774_v16 = vld [vmem:[%s5279_s23 + $0xb0] sm:$0xff] }
  0x3f   :  { %3012 = vmatprep.subr.bf16.mxu1 %v3011_v56  ;;  %v772_v56 = vld [vmem:[%s5279_s23 + $0xa0] sm:$0xff]  ;;  %v3029_v58 = vpack.c.bf16 %v755_v51, %v754_v50  ;;  %v2501_v5 = vld [vmem:[%s5279_s23 + $0x1b0] sm:$0xff]  ;;  %v761_v22 = vld [vmem:[%s5279_s23 + $0x48] sm:$0xff] }
  0x40   :  { %v758_v6 = vld [vmem:[%s5279_s23 + $0x30] sm:$0xff]  ;;  %v776_v10 = vld [vmem:[%s5279_s23 + $0xc0] sm:$0xff]  ;;  %v779_v26 = vld [vmem:[%s5279_s23 + $0xd8] sm:$0xff] }
  0x41   :  { %2982 = vmatpush3.bf16.msra.mxu0 %v2981_v63  ;;  %v3031_v63 = vpack.c.bf16 %v773_v57, %v772_v56  ;;  %v2485_v8 = vld [vmem:[%s5279_s23 + $0x130] sm:$0xff]  ;;  %v3039_v21 = vpack.c.bf16 %v777_v11, %v776_v10  ;;  %v2506_v27 = vld [vmem:[%s5279_s23 + $0x1d8] sm:$0xff]  ;;  %v745_v28 = vld [vmem:[%s5280_s27 + $0x8] sm:$0xff] }
  0x42   :  { %3014 = vmatpush3.bf16.msra.mxu1 %v3013_v0  ;;  %2984 = vmatprep.subr.bf16.mxu0 %v2983_v3  ;;  %v2483_v0 = vld [vmem:[%s5279_s23 + $0x120] sm:$0xff]  ;;  %v778_v24 = vld [vmem:[%s5279_s23 + $0xd0] sm:$0xff]  ;;  %v2490_v37 = vld [vmem:[%s5279_s23 + $0x158] sm:$0xff] }
  0x43   :  { %3016 = vmatprep.subr.bf16.mxu1 %v3015_v17  ;;  %v2489_v34 = vld [vmem:[%s5279_s23 + $0x150] sm:$0xff]  ;;  %v781_v39 = vld [vmem:[%s5279_s23 + $0xe8] sm:$0xff]  ;;  %v2507_v40 = vld [vmem:[%s5279_s23 + $0x1e0] sm:$0xff] }
  0x44   :  { %v2508_v42 = vld [vmem:[%s5279_s23 + $0x1e8] sm:$0xff]  ;;  %v764_v46 = vld [vmem:[%s5279_s23 + $0x60] sm:$0xff]  ;;  %v782_v53 = vld [vmem:[%s5279_s23 + $0xf0] sm:$0xff] }
  0x45   :  { %2986 = vmatpush3.bf16.msra.mxu0 %v2985_v12  ;;  %v2491_v50 = vld [vmem:[%s5279_s23 + $0x160] sm:$0xff]  ;;  %v3079_v51 = vpack.c.bf16 %v2508_v42, %v2507_v40  ;;  %v783_v54 = vld [vmem:[%s5279_s23 + $0xf8] sm:$0xff] }
  0x46   :  { %3018 = vmatpush3.bf16.msra.mxu1 %v3017_v13  ;;  %2988 = vmatprep.subr.bf16.mxu0 %v2987_v15  ;;  %v2504_v13 = vld [vmem:[%s5279_s23 + $0x1c8] sm:$0xff]  ;;  %v2510_v56 = vld [vmem:[%s5279_s23 + $0x1f8] sm:$0xff]  ;;  %v744_v10 = vld [vmem:[%s5280_s27] sm:$0xff] }
  0x47   :  { %3020 = vmatprep.subr.bf16.mxu1 %v3019_v23  ;;  %v2487_v23 = vld [vmem:[%s5279_s23 + $0x140] sm:$0xff] }
  0x48   :  { %v748_v42 = vld [vmem:[%s5280_s27 + $0x20] sm:$0xff] }
  0x49   :  { %2990 = vmatpush3.bf16.msra.mxu0 %v2989_v30  ;;  %v3043_v30 = vpack.c.bf16 %v779_v26, %v778_v24  ;;  %v2521_v24 = vld [vmem:[%s5253_s2 + $0x130] sm:$0xff] }
  0x4a   :  { %3022 = vmatpush3.bf16.msra.mxu1 %v3021_v31  ;;  %3024 = vmatprep.subr.bf16.mxu0 %v3023_v33  ;;  %v762_v31 = vld [vmem:[%s5279_s23 + $0x50] sm:$0xff]  ;;  %v763_v33 = vld [vmem:[%s5279_s23 + $0x58] sm:$0xff] }
  0x4b   :  { %3056 = vmatprep.subr.bf16.mxu1 %v3055_v38  ;;  %v780_v38 = vld [vmem:[%s5279_s23 + $0xe0] sm:$0xff]  ;;  %v3045_v43 = vpack.c.bf16 %v763_v33, %v762_v31  ;;  %v749_v33 = vld [vmem:[%s5280_s27 + $0x28] sm:$0xff] }
  0x4c   :  { %478 = vmatmul.mubr.f32.vlgmr.msra.gmra.mrb[8].mxu0 %v3650_v48  ;;  %v2500_v48 = vld [vmem:[%s5279_s23 + $0x1a8] sm:$0xff]  ;;  %v3047_v45 = vpack.c.bf16 %v781_v39, %v780_v38  ;;  %v2523_v38 = vld [vmem:[%s5253_s2 + $0x140] sm:$0xff]  ;;  %v2525_v39 = vld [vmem:[%s5253_s2 + $0x150] sm:$0xff] }
  0x4d   :  { %563 = vmatmul.mubr.f32.vlgmr.msra.gmra.mrb[8].mxu1 %v3655_v49  ;;  %3026 = vmatpush3.bf16.msra.mxu0 %v3025_v44  ;;  %v757_v49 = vld [vmem:[%s5279_s23 + $0x28] sm:$0xff]  ;;  %v3063_v3 = vpack.c.bf16 %v2500_v48, %v2499_v59  ;;  %v3077_v44 = vpack.c.bf16 %v2490_v37, %v2489_v34  ;;  %v3051_v59 = vpack.c.bf16 %v783_v54, %v782_v53  ;;  %v766_v48 = vld [vmem:[%s5279_s23 + $0x70] sm:$0xff]  ;;  %v1210_v53 = vld [vmem:[%s5253_s2 + $0x98] sm:$0xff] }
  0x4e   :  { %3058 = vmatpush3.bf16.msra.mxu1 %v3057_v47  ;;  %482 = vmatprep.mubr.f32.mxu0 %v3685_v62  ;;  %v2484_v62 = vld [vmem:[%s5279_s23 + $0x128] sm:$0xff]  ;;  %v3033_v4 = vpack.c.bf16 %v757_v49, %v756_v61  ;;  %v2493_v61 = vld [vmem:[%s5279_s23 + $0x170] sm:$0xff] }
  0x4f   :  { %567 = vmatprep.mubr.f32.mxu1 %v3694_v1  ;;  %3028 = vmatprep.subr.bf16.mxu0 %v3027_v52  ;;  %v775_v1 = vld [vmem:[%s5279_s23 + $0xb8] sm:$0xff]  ;;  %v3065_v17 = vpack.c.bf16 %v2484_v62, %v2483_v0  ;;  %v765_v47 = vld [vmem:[%s5279_s23 + $0x68] sm:$0xff] }
  0x50   :  { %483 = vmatmul.mubr.f32.gmra.mrb[10].mxu0 %v3699_v2  ;;  %3060 = vmatprep.subr.bf16.mxu1 %v3059_v55  ;;  %v2502_v2 = vld [vmem:[%s5279_s23 + $0x1b8] sm:$0xff]  ;;  %v3035_v9 = vpack.c.bf16 %v775_v1, %v774_v16  ;;  %v2492_v52 = vld [vmem:[%s5279_s23 + $0x168] sm:$0xff]  ;;  %v2509_v55 = vld [vmem:[%s5279_s23 + $0x1f0] sm:$0xff]  ;;  %v3049_v57 = vpack.c.bf16 %v765_v47, %v764_v46 }
  0x51   :  { %568 = vmatmul.mubr.f32.gmra.mrb[10].mxu1 %v3710_v7  ;;  %3030 = vmatpush3.bf16.msra.mxu0 %v3029_v58  ;;  %v759_v7 = vld [vmem:[%s5279_s23 + $0x38] sm:$0xff]  ;;  %v3067_v12 = vpack.c.bf16 %v2502_v2, %v2501_v5  ;;  %v3081_v58 = vpack.c.bf16 %v2492_v52, %v2491_v50  ;;  %v3083_v49 = vpack.c.bf16 %v2510_v56, %v2509_v55  ;;  %v1192_v0 = vld [vmem:[%s5253_s2 + $0x8] sm:$0xff]  ;;  %v1191_v2 = vld [vmem:[%s5253_s2] sm:$0xff] }
  0x52   :  { %3062 = vmatpush3.bf16.msra.mxu1 %v3061_v60  ;;  %487 = vmatprep.mubr.f32.mxu0 %v3733_v14  ;;  %v2486_v14 = vld [vmem:[%s5279_s23 + $0x138] sm:$0xff]  ;;  %v3037_v15 = vpack.c.bf16 %v759_v7, %v758_v6  ;;  %v1196_v7 = vld [vmem:[%s5253_s2 + $0x28] sm:$0xff]  ;;  %v1203_v46 = vld [vmem:[%s5253_s2 + $0x60] sm:$0xff] }
  0x53   :  { %572 = vmatprep.mubr.f32.mxu1 %v3742_v19  ;;  %3032 = vmatprep.subr.bf16.mxu0 %v3031_v63  ;;  %v2503_v19 = vld [vmem:[%s5279_s23 + $0x1c0] sm:$0xff]  ;;  %v3069_v18 = vpack.c.bf16 %v2486_v14, %v2485_v8  ;;  %v767_v60 = vld [vmem:[%s5279_s23 + $0x78] sm:$0xff]  ;;  %v2517_v14 = vld [vmem:[%s5253_s2 + $0x110] sm:$0xff] }
  0x54   :  { %488 = vmatmul.mubr.f32.gmra.mrb[12].mxu0 %v3747_v20  ;;  %3064 = vmatprep.subr.bf16.mxu1 %v3063_v3  ;;  %v760_v20 = vld [vmem:[%s5279_s23 + $0x40] sm:$0xff]  ;;  %v2494_v63 = vld [vmem:[%s5279_s23 + $0x178] sm:$0xff]  ;;  %v2516_v3 = vld [vmem:[%s5253_s2 + $0x108] sm:$0xff]  ;;  %v3053_v1 = vpack.c.bf16 %v767_v60, %v766_v48 }
  0x55   :  { %573 = vmatmul.mubr.f32.gmra.mrb[12].mxu1 %v3758_v25  ;;  %3034 = vmatpush3.bf16.msra.mxu0 %v3033_v4  ;;  %v3071_v25 = vpack.c.bf16 %v2504_v13, %v2503_v19  ;;  %v3041_v29 = vpack.c.bf16 %v761_v22, %v760_v20  ;;  %v1194_v62 = vld [vmem:[%s5253_s2 + $0x18] sm:$0xff]  ;;  %v3085_v4 = vpack.c.bf16 %v2494_v63, %v2493_v61  ;;  %v1200_v22 = vld [vmem:[%s5253_s2 + $0x48] sm:$0xff]  ;;  %v1205_v47 = vld [vmem:[%s5253_s2 + $0x70] sm:$0xff] }
  0x56   :  { %3066 = vmatpush3.bf16.msra.mxu1 %v3065_v17  ;;  %492 = vmatprep.mubr.f32.mxu0 %v3781_v32  ;;  %v2488_v32 = vld [vmem:[%s5279_s23 + $0x148] sm:$0xff]  ;;  %v2518_v16 = vld [vmem:[%s5253_s2 + $0x118] sm:$0xff]  ;;  %v3087_v5 = vpack.c.bf16 %v1194_v62, %v1192_v0  ;;  %v1193_v17 = vld [vmem:[%s5253_s2 + $0x10] sm:$0xff] }
  0x57   :  { %577 = vmatprep.mubr.f32.mxu1 %v3790_v35  ;;  %3036 = vmatprep.subr.bf16.mxu0 %v3035_v9  ;;  %v2505_v35 = vld [vmem:[%s5279_s23 + $0x1d0] sm:$0xff]  ;;  %v3119_v6 = vpack.c.bf16 %v2518_v16, %v2516_v3  ;;  %v1198_v8 = vld [vmem:[%s5253_s2 + $0x38] sm:$0xff]  ;;  %v2515_v9 = vld [vmem:[%s5253_s2 + $0x100] sm:$0xff]  ;;  %v3089_v11 = vpack.c.bf16 %v1193_v17, %v1191_v2  ;;  %v3305_v17 = vmov 0.0  }
  0x58   :  { %493 = vmatmul.mubr.f32.gmra.mrb[14].mxu0 %v3795_v36  ;;  %3068 = vmatprep.subr.bf16.mxu1 %v3067_v12  ;;  %v3073_v36 = vpack.c.bf16 %v2488_v32, %v2487_v23  ;;  %v2520_v12 = vld [vmem:[%s5253_s2 + $0x128] sm:$0xff]  ;;  %v2522_v19 = vld [vmem:[%s5253_s2 + $0x138] sm:$0xff]  ;;  %v3091_v13 = vpack.c.bf16 %v1198_v8, %v1196_v7  ;;  %v3121_v20 = vpack.c.bf16 %v2517_v14, %v2515_v9  ;;  %v2519_v32 = vld [vmem:[%s5253_s2 + $0x120] sm:$0xff] }
  0x59   :  { %578 = vmatmul.mubr.f32.gmra.mrb[14].mxu1 %v3806_v41  ;;  %3038 = vmatpush3.bf16.msra.mxu0 %v3037_v15  ;;  %v3075_v41 = vpack.c.bf16 %v2506_v27, %v2505_v35  ;;  %v1195_v15 = vld [vmem:[%s5253_s2 + $0x20] sm:$0xff]  ;;  %v1202_v23 = vld [vmem:[%s5253_s2 + $0x58] sm:$0xff]  ;;  %v2524_v35 = vld [vmem:[%s5253_s2 + $0x148] sm:$0xff]  ;;  %v3125_v31 = vpack.c.bf16 %v2521_v24, %v2519_v32 }
  0x5a   :  { %3070 = vmatpush3.bf16.msra.mxu1 %v3069_v18  ;;  %3040 = vmatprep.subr.bf16.mxu0 %v3039_v21  ;;  %v1197_v18 = vld [vmem:[%s5253_s2 + $0x30] sm:$0xff]  ;;  %v747_v21 = vld [vmem:[%s5280_s27 + $0x18] sm:$0xff]  ;;  %v1204_v34 = vld [vmem:[%s5253_s2 + $0x68] sm:$0xff] }
  0x5b   :  { %3072 = vmatprep.subr.bf16.mxu1 %v3071_v25  ;;  %848 = vmatprep.mubr.f32.mxu0 %v745_v28  ;;  %v3123_v25 = vpack.c.bf16 %v2522_v19, %v2520_v12  ;;  %v3093_v26 = vpack.c.bf16 %v1197_v18, %v1195_v15  ;;  %v2526_v27 = vld [vmem:[%s5253_s2 + $0x158] sm:$0xff]  ;;  %v1208_v52 = vld [vmem:[%s5253_s2 + $0x88] sm:$0xff]  ;;  %v2527_v55 = vld [vmem:[%s5253_s2 + $0x160] sm:$0xff] }
  0x5c   :  { %1007 = vmatprep.mubr.f32.mxu1 %v745_v28  ;;  %v746_v28 = vld [vmem:[%s5280_s27 + $0x10] sm:$0xff]  ;;  %v3127_v37 = vpack.c.bf16 %v2526_v27, %v2524_v35  ;;  %v751_v50 = vld [vmem:[%s5280_s27 + $0x38] sm:$0xff]  ;;  %v3103_v60 = vpack.c.bf16 %v1210_v53, %v1208_v52  ;;  %v1207_v61 = vld [vmem:[%s5253_s2 + $0x80] sm:$0xff] }
  0x5d   :  { %3042 = vmatpush3.bf16.msra.mxu0 %v3041_v29  ;;  %v3095_v29 = vpack.c.bf16 %v1202_v23, %v1200_v22  ;;  %v2529_v56 = vld [vmem:[%s5253_s2 + $0x170] sm:$0xff]  ;;  %v2534_v48 = vld [vmem:[%s5253_s2 + $0x198] sm:$0xff]  ;;  %v1212_v0 = vld [vmem:[%s5253_s2 + $0xa8] sm:$0xff] }
  0x5e   :  { %3074 = vmatpush3.bf16.msra.mxu1 %v3073_v36  ;;  %3044 = vmatprep.subr.bf16.mxu0 %v3043_v30  ;;  %v1199_v36 = vld [vmem:[%s5253_s2 + $0x40] sm:$0xff]  ;;  %v1201_v30 = vld [vmem:[%s5253_s2 + $0x50] sm:$0xff]  ;;  %v3133_v63 = vpack.c.bf16 %v2529_v56, %v2527_v55  ;;  %v1214_v62 = vld [vmem:[%s5253_s2 + $0xb8] sm:$0xff] }
  0x5f   :  { %3076 = vmatprep.subr.bf16.mxu1 %v3075_v41  ;;  %v1206_v41 = vld [vmem:[%s5253_s2 + $0x78] sm:$0xff]  ;;  %v3097_v40 = vpack.c.bf16 %v1201_v30, %v1199_v36  ;;  %v2531_v16 = vld [vmem:[%s5253_s2 + $0x180] sm:$0xff]  ;;  %v1213_v8 = vld [vmem:[%s5253_s2 + $0xb0] sm:$0xff] }
  0x60   :  { %v2538_v2 = vld [vmem:[%s5253_s2 + $0x1b8] sm:$0xff]  ;;  %v1211_v7 = vld [vmem:[%s5253_s2 + $0xa0] sm:$0xff]  ;;  %v1216_v14 = vld [vmem:[%s5253_s2 + $0xc8] sm:$0xff] }
  0x61   :  { %3046 = vmatpush3.bf16.msra.mxu0 %v3045_v43  ;;  %v2528_v43 = vld [vmem:[%s5253_s2 + $0x168] sm:$0xff]  ;;  %v2535_v12 = vld [vmem:[%s5253_s2 + $0x1a0] sm:$0xff]  ;;  %v2537_v19 = vld [vmem:[%s5253_s2 + $0x1b0] sm:$0xff] }
  0x62   :  { %3078 = vmatpush3.bf16.msra.mxu1 %v3077_v44  ;;  %3048 = vmatprep.subr.bf16.mxu0 %v3047_v45  ;;  %v2530_v44 = vld [vmem:[%s5253_s2 + $0x178] sm:$0xff]  ;;  %v3099_v45 = vpack.c.bf16 %v1206_v41, %v1204_v34  ;;  %v2540_v15 = vld [vmem:[%s5253_s2 + $0x1c8] sm:$0xff]  ;;  %v1217_v22 = vld [vmem:[%s5253_s2 + $0xd0] sm:$0xff]  ;;  %v3141_v23 = vpack.c.bf16 %v2537_v19, %v2535_v12 }
  0x63   :  { %3080 = vmatprep.subr.bf16.mxu1 %v3079_v51  ;;  %v3129_v51 = vpack.c.bf16 %v2525_v39, %v2523_v38  ;;  %v3131_v54 = vpack.c.bf16 %v2530_v44, %v2528_v43  ;;  %v2542_v18 = vld [vmem:[%s5253_s2 + $0x1d8] sm:$0xff]  ;;  %v2541_v35 = vld [vmem:[%s5253_s2 + $0x1d0] sm:$0xff]  ;;  %v1219_v30 = vld [vmem:[%s5253_s2 + $0xe0] sm:$0xff] }
  0x64   :  { %v1222_v32 = vld [vmem:[%s5253_s2 + $0xf8] sm:$0xff]  ;;  %v3143_v24 = vpack.c.bf16 %v2542_v18, %v2540_v15  ;;  %v1537_v34 = vld [vmem:[%s5254_s3 + $0x8] sm:$0xff]  ;;  %v2543_v38 = vld [vmem:[%s5253_s2 + $0x1e0] sm:$0xff] }
  0x65   :  { %3050 = vmatpush3.bf16.msra.mxu0 %v3049_v57  ;;  %v3101_v57 = vpack.c.bf16 %v1205_v47, %v1203_v46  ;;  %v1545_v41 = vld [vmem:[%s5254_s3 + $0x48] sm:$0xff]  ;;  %v2545_v39 = vld [vmem:[%s5253_s2 + $0x1f0] sm:$0xff]  ;;  %v1547_v43 = vld [vmem:[%s5254_s3 + $0x58] sm:$0xff] }
  0x66   :  { %3082 = vmatpush3.bf16.msra.mxu1 %v3081_v58  ;;  %3052 = vmatprep.subr.bf16.mxu0 %v3051_v59  ;;  %v750_v58 = vld [vmem:[%s5280_s27 + $0x30] sm:$0xff]  ;;  %v2532_v59 = vld [vmem:[%s5253_s2 + $0x188] sm:$0xff]  ;;  %v3151_v44 = vpack.c.bf16 %v1545_v41, %v1537_v34  ;;  %v1544_v46 = vld [vmem:[%s5254_s3 + $0x40] sm:$0xff]  ;;  %v3149_v47 = vpack.c.bf16 %v2545_v39, %v2543_v38 }
  0x67   :  { %3084 = vmatprep.subr.bf16.mxu1 %v3083_v49  ;;  %v1209_v49 = vld [vmem:[%s5253_s2 + $0x90] sm:$0xff]  ;;  %v3135_v3 = vpack.c.bf16 %v2534_v48, %v2532_v59  ;;  %v1189_v55 = vld [vmem:[%s5255_s6] sm:$0xff]  ;;  %v1595_v15 = vld [vmem:[%s5254_s3 + $0x1d8] sm:$0xff] }
  0x68   :  { %v1538_v53 = vld [vmem:[%s5254_s3 + $0x10] sm:$0xff]  ;;  %v1552_v48 = vld [vmem:[%s5254_s3 + $0x80] sm:$0xff]  ;;  %v1565_v34 = vld [vmem:[%s5254_s3 + $0xe8] sm:$0xff] }
  0x69   :  { %3054 = vmatpush3.bf16.msra.mxu0 %v3053_v1  ;;  %v2533_v1 = vld [vmem:[%s5253_s2 + $0x190] sm:$0xff]  ;;  %v4452_v39 = vld [vmem:[%s5256_s7] sm:$0xff] }
  0x6a   :  { %3086 = vmatpush3.bf16.msra.mxu1 %v3085_v4  ;;  %3088 = vmatprep.subr.bf16.mxu0 %v3087_v5  ;;  %v3105_v4 = vpack.c.bf16 %v1209_v49, %v1207_v61  ;;  %v2536_v5 = vld [vmem:[%s5253_s2 + $0x1a8] sm:$0xff]  ;;  %v3137_v9 = vpack.c.bf16 %v2533_v1, %v2531_v16  ;;  %v1578_v12 = vld [vmem:[%s5254_s3 + $0x150] sm:$0xff] }
  0x6b   :  { %3120 = vmatprep.subr.bf16.mxu1 %v3119_v6  ;;  %v3107_v6 = vpack.c.bf16 %v1214_v62, %v1212_v0  ;;  %v1569_v49 = vld [vmem:[%s5254_s3 + $0x108] sm:$0xff]  ;;  %v1554_v62 = vld [vmem:[%s5254_s3 + $0x90] sm:$0xff] }
  0x6c   :  { %849 = vmatmul.mubr.f32.vlgmr.msra.gmra.mrb[16].mxu0 %v744_v10  ;;  %v1190_v1 = vld [vmem:[%s5255_s6 + $0x8] sm:$0xff]  ;;  %v1550_v38 = vld [vmem:[%s5254_s3 + $0x70] sm:$0xff] }
  0x6d   :  { %1008 = vmatmul.mubr.f32.vlgmr.msra.gmra.mrb[16].mxu1 %v744_v10  ;;  %3090 = vmatpush1.bf16.msra.mxu0 %v3089_v11  ;;  %v1218_v10 = vld [vmem:[%s5253_s2 + $0xd8] sm:$0xff]  ;;  %v3139_v11 = vpack.c.bf16 %v2538_v2, %v2536_v5 }
  0x6e   :  { %1012 = vmatprep.mubr.f32.mxu1 %v747_v21  ;;  %3092 = vmatprep.subr.bf16.mxu0 %v3091_v13  ;;  %v3109_v13 = vpack.c.bf16 %v1213_v8, %v1211_v7  ;;  %v1579_v5 = vld [vmem:[%s5254_s3 + $0x158] sm:$0xff]  ;;  %v1576_v7 = vld [vmem:[%s5254_s3 + $0x140] sm:$0xff] }
  0x6f   :  { %3122 = vmatpush1.bf16.msra.mxu1 %v3121_v20  ;;  %853 = vmatprep.mubr.f32.mxu0 %v747_v21  ;;  %v3111_v21 = vpack.c.bf16 %v1218_v10, %v1216_v14  ;;  %v1215_v20 = vld [vmem:[%s5253_s2 + $0xc0] sm:$0xff]  ;;  %v1593_v14 = vld [vmem:[%s5254_s3 + $0x1c8] sm:$0xff] }
  0x70   :  { %854 = vmatmul.mubr.f32.gmra.mrb[18].mxu0 %v746_v28  ;;  %3124 = vmatprep.subr.bf16.mxu1 %v3123_v25  ;;  %v1220_v25 = vld [vmem:[%s5253_s2 + $0xe8] sm:$0xff]  ;;  %v3113_v27 = vpack.c.bf16 %v1217_v22, %v1215_v20  ;;  %v1592_v20 = vld [vmem:[%s5254_s3 + $0x1c0] sm:$0xff] }
  0x71   :  { %1013 = vmatmul.mubr.f32.gmra.mrb[18].mxu1 %v746_v28  ;;  %3094 = vmatpush1.bf16.msra.mxu0 %v3093_v26  ;;  %v2539_v26 = vld [vmem:[%s5253_s2 + $0x1c0] sm:$0xff]  ;;  %v2544_v28 = vld [vmem:[%s5253_s2 + $0x1e8] sm:$0xff]  ;;  %v3115_v36 = vpack.c.bf16 %v1222_v32, %v1220_v25 }
  0x72   :  { %3096 = vmatprep.subr.bf16.mxu0 %v3095_v29  ;;  %858 = vmatprep.mubr.f32.mxu0 %v749_v33  ;;  %v2546_v29 = vld [vmem:[%s5253_s2 + $0x1f8] sm:$0xff]  ;;  %v1549_v25 = vld [vmem:[%s5254_s3 + $0x68] sm:$0xff] }
  0x73   :  { %3126 = vmatpush1.bf16.msra.mxu1 %v3125_v31  ;;  %1017 = vmatprep.mubr.f32.mxu1 %v749_v33  ;;  %v1221_v31 = vld [vmem:[%s5253_s2 + $0xf0] sm:$0xff]  ;;  %v3145_v33 = vpack.c.bf16 %v2541_v35, %v2539_v26 }
  0x74   :  { %3128 = vmatprep.subr.bf16.mxu1 %v3127_v37  ;;  %859 = vmatmul.mubr.f32.gmra.mrb[20].mxu0 %v748_v42  ;;  %v3147_v37 = vpack.c.bf16 %v2546_v29, %v2544_v28  ;;  %v1594_v26 = vld [vmem:[%s5254_s3 + $0x1d0] sm:$0xff]  ;;  %v1551_v28 = vld [vmem:[%s5254_s3 + $0x78] sm:$0xff] }
  0x75   :  { %3098 = vmatpush1.bf16.msra.mxu0 %v3097_v40  ;;  %863 = vmatprep.mubr.f32.mxu0 %v751_v50  ;;  %v3117_v40 = vpack.c.bf16 %v1221_v31, %v1219_v30  ;;  %v1548_v30 = vld [vmem:[%s5254_s3 + $0x60] sm:$0xff] }
  0x76   :  { %3100 = vmatprep.subr.bf16.mxu0 %v3099_v45  ;;  %1018 = vmatmul.mubr.f32.gmra.mrb[20].mxu1 %v748_v42  ;;  %v1539_v42 = vld [vmem:[%s5254_s3 + $0x18] sm:$0xff]  ;;  %v1536_v45 = vld [vmem:[%s5254_s3] sm:$0xff] }
  0x77   :  { %3130 = vmatpush1.bf16.msra.mxu1 %v3129_v51  ;;  %1022 = vmatprep.mubr.f32.mxu1 %v751_v50  ;;  %v1553_v50 = vld [vmem:[%s5254_s3 + $0x88] sm:$0xff]  ;;  %v3167_v52 = vpack.c.bf16 %v1547_v43, %v1539_v42  ;;  %v3153_v56 = vpack.c.bf16 %v1544_v46, %v1536_v45  ;;  %v1559_v42 = vld [vmem:[%s5254_s3 + $0xb8] sm:$0xff]  ;;  %v1556_v45 = vld [vmem:[%s5254_s3 + $0xa0] sm:$0xff] }
  0x78   :  { %3132 = vmatprep.subr.bf16.mxu1 %v3131_v54  ;;  %864 = vmatmul.mubr.f32.gmra.mrb[22].mxu0 %v750_v58  ;;  %v1561_v51 = vld [vmem:[%s5254_s3 + $0xc8] sm:$0xff]  ;;  %v1546_v54 = vld [vmem:[%s5254_s3 + $0x50] sm:$0xff]  ;;  %v1567_v43 = vld [vmem:[%s5254_s3 + $0xf8] sm:$0xff] }
  0x79   :  { %3102 = vmatpush1.bf16.msra.mxu0 %v3101_v57  ;;  %1287 = vmatprep.mubr.f32.mxu0 %v3305_v17  ;;  %v1555_v57 = vld [vmem:[%s5254_s3 + $0x98] sm:$0xff]  ;;  %v3155_v59 = vpack.c.bf16 %v1561_v51, %v1553_v50  ;;  %v3169_v61 = vpack.c.bf16 %v1546_v54, %v1538_v53  ;;  %v1564_v46 = vld [vmem:[%s5254_s3 + $0xe0] sm:$0xff]  ;;  %v1573_v50 = vld [vmem:[%s5254_s3 + $0x128] sm:$0xff] }
  0x7a   :  { %3104 = vmatprep.subr.bf16.mxu0 %v3103_v60  ;;  %1023 = vmatmul.mubr.f32.gmra.mrb[22].mxu1 %v750_v58  ;;  %v1563_v58 = vld [vmem:[%s5254_s3 + $0xd8] sm:$0xff]  ;;  %v1560_v60 = vld [vmem:[%s5254_s3 + $0xc0] sm:$0xff]  ;;  %v1581_v51 = vld [vmem:[%s5254_s3 + $0x168] sm:$0xff] }
  0x7b   :  { %3134 = vmatpush1.bf16.msra.mxu1 %v3133_v63  ;;  %1421 = vmatprep.mubr.f32.mxu1 %v3305_v17  ;;  %v1577_v63 = vld [vmem:[%s5254_s3 + $0x148] sm:$0xff]  ;;  %v3171_v0 = vpack.c.bf16 %v1563_v58, %v1555_v57  ;;  %v3157_v16 = vpack.c.bf16 %v1560_v60, %v1552_v48  ;;  %v1558_v53 = vld [vmem:[%s5254_s3 + $0xb0] sm:$0xff]  ;;  %v1583_v57 = vld [vmem:[%s5254_s3 + $0x178] sm:$0xff]  ;;  %v3191_v58 = vpack.c.bf16 %v1581_v51, %v1573_v50 }
  0x7c   :  { %3136 = vmatprep.subr.bf16.mxu1 %v3135_v3  ;;  %v1562_v3 = vld [vmem:[%s5254_s3 + $0xd0] sm:$0xff]  ;;  %v3159_v2 = vpack.c.bf16 %v1577_v63, %v1569_v49  ;;  %v1580_v48 = vld [vmem:[%s5254_s3 + $0x160] sm:$0xff]  ;;  %v1597_v49 = vld [vmem:[%s5254_s3 + $0x1e8] sm:$0xff] }
  0x7d   :  { %3106 = vmatpush1.bf16.msra.mxu0 %v3105_v4  ;;  %v1571_v4 = vld [vmem:[%s5254_s3 + $0x118] sm:$0xff]  ;;  %v3173_v8 = vpack.c.bf16 %v1562_v3, %v1554_v62  ;;  %v1566_v54 = vld [vmem:[%s5254_s3 + $0xf0] sm:$0xff] }
  0x7e   :  { %3108 = vmatprep.subr.bf16.mxu0 %v3107_v6  ;;  %v1568_v6 = vld [vmem:[%s5254_s3 + $0x100] sm:$0xff]  ;;  %v3175_v10 = vpack.c.bf16 %v1579_v5, %v1571_v4  ;;  %v3205_v60 = vpack.c.bf16 %v1566_v54, %v1558_v53  ;;  %v1582_v62 = vld [vmem:[%s5254_s3 + $0x170] sm:$0xff]  ;;  %v2606_v54 = vld [vmem:[%s5254_s3 + $0x398] sm:$0xff] }
  0x7f   :  { %3138 = vmatpush1.bf16.msra.mxu1 %v3137_v9  ;;  %v1585_v9 = vld [vmem:[%s5254_s3 + $0x188] sm:$0xff]  ;;  %v3161_v19 = vpack.c.bf16 %v1576_v7, %v1568_v6  ;;  %v1588_v5 = vld [vmem:[%s5254_s3 + $0x1a0] sm:$0xff]  ;;  %v2589_v51 = vld [vmem:[%s5254_s3 + $0x310] sm:$0xff] }
  0x80   :  { %3140 = vmatprep.subr.bf16.mxu1 %v3139_v11  ;;  %v1570_v11 = vld [vmem:[%s5254_s3 + $0x110] sm:$0xff]  ;;  %v3163_v18 = vpack.c.bf16 %v1593_v14, %v1585_v9  ;;  %v2556_v7 = vld [vmem:[%s5254_s3 + $0x208] sm:$0xff] }
  0x81   :  { %3110 = vmatpush1.bf16.msra.mxu0 %v3109_v13  ;;  %v1587_v13 = vld [vmem:[%s5254_s3 + $0x198] sm:$0xff]  ;;  %v3177_v22 = vpack.c.bf16 %v1578_v12, %v1570_v11  ;;  %v1590_v14 = vld [vmem:[%s5254_s3 + $0x1b0] sm:$0xff] }
  0x82   :  { %3112 = vmatprep.subr.bf16.mxu0 %v3111_v21  ;;  %v1584_v21 = vld [vmem:[%s5254_s3 + $0x180] sm:$0xff]  ;;  %v3179_v32 = vpack.c.bf16 %v1595_v15, %v1587_v13  ;;  %v2558_v12 = vld [vmem:[%s5254_s3 + $0x218] sm:$0xff] }
  0x83   :  { %3142 = vmatpush1.bf16.msra.mxu1 %v3141_v23  ;;  %v1541_v23 = vld [vmem:[%s5254_s3 + $0x28] sm:$0xff]  ;;  %v3165_v35 = vpack.c.bf16 %v1592_v20, %v1584_v21  ;;  %v2555_v15 = vld [vmem:[%s5254_s3 + $0x200] sm:$0xff] }
  0x84   :  { %3144 = vmatprep.subr.bf16.mxu1 %v3143_v24  ;;  %v1586_v24 = vld [vmem:[%s5254_s3 + $0x190] sm:$0xff]  ;;  %v3183_v29 = vpack.c.bf16 %v1549_v25, %v1541_v23  ;;  %v2572_v20 = vld [vmem:[%s5254_s3 + $0x288] sm:$0xff] }
  0x85   :  { %3114 = vmatpush1.bf16.msra.mxu0 %v3113_v27  ;;  %v1543_v27 = vld [vmem:[%s5254_s3 + $0x38] sm:$0xff]  ;;  %v3181_v31 = vpack.c.bf16 %v1594_v26, %v1586_v24  ;;  %v2557_v25 = vld [vmem:[%s5254_s3 + $0x210] sm:$0xff] }
  0x86   :  { %3116 = vmatprep.subr.bf16.mxu0 %v3115_v36  ;;  %v1540_v36 = vld [vmem:[%s5254_s3 + $0x20] sm:$0xff]  ;;  %v3199_v41 = vpack.c.bf16 %v1551_v28, %v1543_v27  ;;  %v2574_v26 = vld [vmem:[%s5254_s3 + $0x298] sm:$0xff] }
  0x87   :  { %3146 = vmatpush1.bf16.msra.mxu1 %v3145_v33  ;;  %v1557_v33 = vld [vmem:[%s5254_s3 + $0xa8] sm:$0xff]  ;;  %v2571_v28 = vld [vmem:[%s5254_s3 + $0x280] sm:$0xff] }
  0x88   :  { %3148 = vmatprep.subr.bf16.mxu1 %v3147_v37  ;;  %v1542_v37 = vld [vmem:[%s5254_s3 + $0x30] sm:$0xff] }
  0x89   :  { %3118 = vmatpush1.bf16.msra.mxu0 %v3117_v40  ;;  %v3185_v40 = vpack.c.bf16 %v1548_v30, %v1540_v36  ;;  %v2588_v30 = vld [vmem:[%s5254_s3 + $0x308] sm:$0xff] }
  0x8a   :  { %3152 = vmatprep.subr.bf16.mxu0 %v3151_v44  ;;  %v3187_v44 = vpack.c.bf16 %v1565_v34, %v1557_v33  ;;  %v2573_v34 = vld [vmem:[%s5254_s3 + $0x290] sm:$0xff] }
  0x8b   :  { %3150 = vmatpush1.bf16.msra.mxu1 %v3149_v47  ;;  %v3201_v47 = vpack.c.bf16 %v1550_v38, %v1542_v37  ;;  %v2590_v38 = vld [vmem:[%s5254_s3 + $0x318] sm:$0xff] }
  0x8c   :  { %1288 = vmatmul.mubr.f32.vlgmr.msra.gmra.mrb[24].mxu0 %v1189_v55  ;;  %3168 = vmatprep.subr.bf16.mxu1 %v3167_v52  ;;  %v3203_v52 = vpack.c.bf16 %v1567_v43, %v1559_v42  ;;  %v2587_v43 = vld [vmem:[%s5254_s3 + $0x300] sm:$0xff] }
  0x8d   :  { %3154 = vmatpush1.bf16.msra.mxu0 %v3153_v56  ;;  %1293 = vmatprep.mubr.f32.mxu0 %v3305_v17  ;;  %v1575_v56 = vld [vmem:[%s5254_s3 + $0x138] sm:$0xff] }
  0x8e   :  { %1422 = vmatmul.mubr.f32.vlgmr.msra.gmra.mrb[24].mxu1 %v1189_v55  ;;  %3156 = vmatprep.subr.bf16.mxu0 %v3155_v59  ;;  %v3189_v55 = vpack.c.bf16 %v1564_v46, %v1556_v45  ;;  %v1572_v59 = vld [vmem:[%s5254_s3 + $0x120] sm:$0xff]  ;;  %v3207_v63 = vpack.c.bf16 %v1583_v57, %v1575_v56  ;;  %v2604_v46 = vld [vmem:[%s5254_s3 + $0x388] sm:$0xff] }
  0x8f   :  { %3170 = vmatpush1.bf16.msra.mxu1 %v3169_v61  ;;  %1427 = vmatprep.mubr.f32.mxu1 %v3305_v17  ;;  %v1589_v61 = vld [vmem:[%s5254_s3 + $0x1a8] sm:$0xff]  ;;  %v3193_v3 = vpack.c.bf16 %v1580_v48, %v1572_v59  ;;  %v2603_v57 = vld [vmem:[%s5254_s3 + $0x380] sm:$0xff] }
  0x90   :  { %3172 = vmatprep.subr.bf16.mxu1 %v3171_v0  ;;  %1294 = vmatmul.mubr.f32.gmra.mrb[26].mxu0 %v1190_v1  ;;  %v1574_v0 = vld [vmem:[%s5254_s3 + $0x130] sm:$0xff]  ;;  %v3195_v4 = vpack.c.bf16 %v1597_v49, %v1589_v61  ;;  %v2560_v48 = vld [vmem:[%s5254_s3 + $0x228] sm:$0xff] }
  0x91   :  { %3158 = vmatpush1.bf16.msra.mxu0 %v3157_v16  ;;  %1667 = vmatprep.mubr.f32.mxu0 %v3305_v17  ;;  %v1591_v16 = vld [vmem:[%s5254_s3 + $0x1b8] sm:$0xff]  ;;  %v3209_v6 = vpack.c.bf16 %v1582_v62, %v1574_v0  ;;  %v2605_v49 = vld [vmem:[%s5254_s3 + $0x390] sm:$0xff] }
  0x92   :  { %3160 = vmatprep.subr.bf16.mxu0 %v3159_v2  ;;  %1428 = vmatmul.mubr.f32.gmra.mrb[26].mxu1 %v1190_v1  ;;  %v1599_v1 = vld [vmem:[%s5254_s3 + $0x1f8] sm:$0xff]  ;;  %v1596_v2 = vld [vmem:[%s5254_s3 + $0x1e0] sm:$0xff] }
  0x93   :  { %3174 = vmatpush1.bf16.msra.mxu1 %v3173_v8  ;;  %1738 = vmatprep.mubr.f32.mxu1 %v3305_v17  ;;  %v2564_v8 = vld [vmem:[%s5254_s3 + $0x248] sm:$0xff]  ;;  %v3211_v9 = vpack.c.bf16 %v1599_v1, %v1591_v16  ;;  %v3197_v11 = vpack.c.bf16 %v1596_v2, %v1588_v5  ;;  %v2562_v62 = vld [vmem:[%s5254_s3 + $0x238] sm:$0xff]  ;;  %v2559_v1 = vld [vmem:[%s5254_s3 + $0x220] sm:$0xff] }
  0x94   :  { %3176 = vmatprep.subr.bf16.mxu1 %v3175_v10  ;;  %v1598_v10 = vld [vmem:[%s5254_s3 + $0x1f0] sm:$0xff]  ;;  %v3215_v13 = vpack.c.bf16 %v2564_v8, %v2556_v7  ;;  %v2576_v2 = vld [vmem:[%s5254_s3 + $0x2a8] sm:$0xff] }
  0x95   :  { %3162 = vmatpush1.bf16.msra.mxu0 %v3161_v19  ;;  %v2566_v19 = vld [vmem:[%s5254_s3 + $0x258] sm:$0xff]  ;;  %v3213_v21 = vpack.c.bf16 %v1598_v10, %v1590_v14  ;;  %v2561_v8 = vld [vmem:[%s5254_s3 + $0x230] sm:$0xff] }
  0x96   :  { %3164 = vmatprep.subr.bf16.mxu0 %v3163_v18  ;;  %v2563_v18 = vld [vmem:[%s5254_s3 + $0x240] sm:$0xff]  ;;  %v3231_v23 = vpack.c.bf16 %v2566_v19, %v2558_v12  ;;  %v2578_v10 = vld [vmem:[%s5254_s3 + $0x2b8] sm:$0xff] }
  0x97   :  { %3178 = vmatpush1.bf16.msra.mxu1 %v3177_v22  ;;  %v2580_v22 = vld [vmem:[%s5254_s3 + $0x2c8] sm:$0xff]  ;;  %v3217_v24 = vpack.c.bf16 %v2563_v18, %v2555_v15  ;;  %v2575_v19 = vld [vmem:[%s5254_s3 + $0x2a0] sm:$0xff] }
  0x98   :  { %3180 = vmatprep.subr.bf16.mxu1 %v3179_v32  ;;  %v2565_v32 = vld [vmem:[%s5254_s3 + $0x250] sm:$0xff]  ;;  %v3219_v27 = vpack.c.bf16 %v2580_v22, %v2572_v20  ;;  %v2592_v18 = vld [vmem:[%s5254_s3 + $0x328] sm:$0xff] }
  0x99   :  { %3166 = vmatpush1.bf16.msra.mxu0 %v3165_v35  ;;  %v2582_v35 = vld [vmem:[%s5254_s3 + $0x2d8] sm:$0xff]  ;;  %v3233_v36 = vpack.c.bf16 %v2565_v32, %v2557_v25  ;;  %v2577_v22 = vld [vmem:[%s5254_s3 + $0x2b0] sm:$0xff] }
  0x9a   :  { %3184 = vmatprep.subr.bf16.mxu0 %v3183_v29  ;;  %v2579_v29 = vld [vmem:[%s5254_s3 + $0x2c0] sm:$0xff]  ;;  %v3235_v33 = vpack.c.bf16 %v2582_v35, %v2574_v26  ;;  %v2594_v32 = vld [vmem:[%s5254_s3 + $0x338] sm:$0xff] }
  0x9b   :  { %3182 = vmatpush1.bf16.msra.mxu1 %v3181_v31  ;;  %v2596_v31 = vld [vmem:[%s5254_s3 + $0x348] sm:$0xff]  ;;  %v3221_v37 = vpack.c.bf16 %v2579_v29, %v2571_v28  ;;  %v2591_v35 = vld [vmem:[%s5254_s3 + $0x320] sm:$0xff] }
  0x9c   :  { %2551 = vmatmul.mubr.msk.f32.vlgmr.msra.gmra.mrb[28].mxu0 %vm869_vm0, %v4452_v39  ;;  %3200 = vmatprep.subr.bf16.mxu1 %v3199_v41  ;;  %v2581_v41 = vld [vmem:[%s5254_s3 + $0x2d0] sm:$0xff]  ;;  %v3223_v42 = vpack.c.bf16 %v2596_v31, %v2588_v30  ;;  %v2608_v29 = vld [vmem:[%s5254_s3 + $0x3a8] sm:$0xff] }
  0x9d   :  { %3186 = vmatpush1.bf16.msra.mxu0 %v3185_v40  ;;  %1809 = vmatprep.mubr.f32.mxu0 %v3305_v17  ;;  %v2598_v40 = vld [vmem:[%s5254_s3 + $0x358] sm:$0xff]  ;;  %v3237_v45 = vpack.c.bf16 %v2581_v41, %v2573_v34  ;;  %v2593_v31 = vld [vmem:[%s5254_s3 + $0x330] sm:$0xff] }
  0x9e   :  { %2552 = vmatmul.mubr.msk.f32.vlgmr.msra.gmra.mrb[28].mxu1 %vm869_vm0, %v4452_v39  ;;  %3188 = vmatprep.subr.bf16.mxu0 %v3187_v44  ;;  %v2595_v44 = vld [vmem:[%s5254_s3 + $0x340] sm:$0xff]  ;;  %v3239_v50 = vpack.c.bf16 %v2598_v40, %v2590_v38  ;;  %v2610_v41 = vld [vmem:[%s5254_s3 + $0x3b8] sm:$0xff] }
  0x9f   :  { %3202 = vmatpush1.bf16.msra.mxu1 %v3201_v47  ;;  %1880 = vmatprep.mubr.f32.mxu1 %v3305_v17  ;;  %v2612_v47 = vld [vmem:[%s5254_s3 + $0x3c8] sm:$0xff]  ;;  %v3225_v53 = vpack.c.bf16 %v2595_v44, %v2587_v43  ;;  %v2607_v38 = vld [vmem:[%s5254_s3 + $0x3a0] sm:$0xff]  ;;  %v2609_v44 = vld [vmem:[%s5254_s3 + $0x3b0] sm:$0xff] }
  0xa0   :  { %3204 = vmatprep.subr.bf16.mxu1 %v3203_v52  ;;  %v2597_v52 = vld [vmem:[%s5254_s3 + $0x350] sm:$0xff]  ;;  %v3227_v56 = vpack.c.bf16 %v2612_v47, %v2604_v46  ;;  %v2615_v40 = vld [vmem:[%s5254_s3 + $0x3e0] sm:$0xff] }
  0xa1   :  { %3190 = vmatpush1.bf16.msra.mxu0 %v3189_v55  ;;  %v2614_v55 = vld [vmem:[%s5254_s3 + $0x3d8] sm:$0xff]  ;;  %v3241_v59 = vpack.c.bf16 %v2597_v52, %v2589_v51  ;;  %v3261_v46 = vpack.c.bf16 %v2615_v40, %v2607_v38 }
  0xa2   :  { %3192 = vmatprep.subr.bf16.mxu0 %v3191_v58  ;;  %v2611_v58 = vld [vmem:[%s5254_s3 + $0x3c0] sm:$0xff]  ;;  %v3243_v61 = vpack.c.bf16 %v2614_v55, %v2606_v54 }
  0xa3   :  { %3206 = vmatpush1.bf16.msra.mxu1 %v3205_v60  ;;  %v2568_v60 = vld [vmem:[%s5254_s3 + $0x268] sm:$0xff]  ;;  %v3229_v0 = vpack.c.bf16 %v2611_v58, %v2603_v57 }
  0xa4   :  { %3208 = vmatprep.subr.bf16.mxu1 %v3207_v63  ;;  %v2613_v63 = vld [vmem:[%s5254_s3 + $0x3d0] sm:$0xff]  ;;  %v3247_v16 = vpack.c.bf16 %v2568_v60, %v2560_v48 }
  0xa5   :  { %3194 = vmatpush1.bf16.msra.mxu0 %v3193_v3  ;;  %v2570_v3 = vld [vmem:[%s5254_s3 + $0x278] sm:$0xff]  ;;  %v3245_v5 = vpack.c.bf16 %v2613_v63, %v2605_v49 }
  0xa6   :  { %3196 = vmatprep.subr.bf16.mxu0 %v3195_v4  ;;  %v2567_v4 = vld [vmem:[%s5254_s3 + $0x260] sm:$0xff]  ;;  %v3263_v7 = vpack.c.bf16 %v2570_v3, %v2562_v62 }
  0xa7   :  { %3210 = vmatpush1.bf16.msra.mxu1 %v3209_v6  ;;  %v2584_v6 = vld [vmem:[%s5254_s3 + $0x2e8] sm:$0xff]  ;;  %v3249_v14 = vpack.c.bf16 %v2567_v4, %v2559_v1 }
  0xa8   :  { %3212 = vmatprep.subr.bf16.mxu1 %v3211_v9  ;;  %v2569_v9 = vld [vmem:[%s5254_s3 + $0x270] sm:$0xff]  ;;  %v3251_v12 = vpack.c.bf16 %v2584_v6, %v2576_v2 }
  0xa9   :  { %3198 = vmatpush1.bf16.msra.mxu0 %v3197_v11  ;;  %v2586_v11 = vld [vmem:[%s5254_s3 + $0x2f8] sm:$0xff]  ;;  %v3265_v15 = vpack.c.bf16 %v2569_v9, %v2561_v8 }
  0xaa   :  { %3216 = vmatprep.subr.bf16.mxu0 %v3215_v13  ;;  %v2583_v13 = vld [vmem:[%s5254_s3 + $0x2e0] sm:$0xff]  ;;  %v3267_v20 = vpack.c.bf16 %v2586_v11, %v2578_v10 }
  0xab   :  { %3214 = vmatpush1.bf16.msra.mxu1 %v3213_v21  ;;  %v2600_v21 = vld [vmem:[%s5254_s3 + $0x368] sm:$0xff]  ;;  %v3253_v25 = vpack.c.bf16 %v2583_v13, %v2575_v19 }
  0xac   :  { %2553 = vmatmul.mubr.msk.f32.vlgmr.msra.gmra.mrb[30].mxu0 %vm869_vm0, %v4452_v39  ;;  %3232 = vmatprep.subr.bf16.mxu1 %v3231_v23  ;;  %v2585_v23 = vld [vmem:[%s5254_s3 + $0x2f0] sm:$0xff]  ;;  %v3255_v26 = vpack.c.bf16 %v2600_v21, %v2592_v18 }
  0xad   :  { %3218 = vmatpush1.bf16.msra.mxu0 %v3217_v24  ;;  %2052 = vmatprep.mubr.f32.mxu0 %v3305_v17  ;;  %v2602_v24 = vld [vmem:[%s5254_s3 + $0x378] sm:$0xff]  ;;  %v3269_v28 = vpack.c.bf16 %v2585_v23, %v2577_v22 }
  0xae   :  { %2554 = vmatmul.mubr.msk.f32.vlgmr.msra.gmra.mrb[30].mxu1 %vm869_vm0, %v4452_v39  ;;  %3220 = vmatprep.subr.bf16.mxu0 %v3219_v27  ;;  %v2599_v27 = vld [vmem:[%s5254_s3 + $0x360] sm:$0xff]  ;;  %v3271_v30 = vpack.c.bf16 %v2602_v24, %v2594_v32 }
  0xaf   :  { %3234 = vmatpush1.bf16.msra.mxu1 %v3233_v36  ;;  %2123 = vmatprep.mubr.f32.mxu1 %v3305_v17  ;;  %v2616_v36 = vld [vmem:[%s5254_s3 + $0x3e8] sm:$0xff]  ;;  %v3257_v34 = vpack.c.bf16 %v2599_v27, %v2591_v35 }
  0xb0   :  { %3236 = vmatprep.subr.bf16.mxu1 %v3235_v33  ;;  %v2601_v33 = vld [vmem:[%s5254_s3 + $0x370] sm:$0xff] }
  0xb1   :  { %3222 = vmatpush1.bf16.msra.mxu0 %v3221_v37  ;;  %v3259_v37 = vpack.c.bf16 %v2616_v36, %v2608_v29 }
  0xb2   :  { %3224 = vmatprep.subr.bf16.mxu0 %v3223_v42  ;;  %v3273_v42 = vpack.c.bf16 %v2601_v33, %v2593_v31 }
  0xb3   :  { %3238 = vmatpush1.bf16.msra.mxu1 %v3237_v45  ;;  %v2617_v45 = vld [vmem:[%s5254_s3 + $0x3f0] sm:$0xff] }
  0xb4   :  { %3240 = vmatprep.subr.bf16.mxu1 %v3239_v50  ;;  %v3277_v47 = vpack.c.bf16 %v2617_v45, %v2609_v44 }
  0xb5   :  { %3226 = vmatpush1.bf16.msra.mxu0 %v3225_v53 }
  0xb6   :  { %3228 = vmatprep.subr.bf16.mxu0 %v3227_v56 }
  0xb7   :  { %3242 = vmatpush1.bf16.msra.mxu1 %v3241_v59 }
  0xb8   :  { %3244 = vmatprep.subr.bf16.mxu1 %v3243_v61 }
  0xb9   :  { %3230 = vmatpush1.bf16.msra.mxu0 %v3229_v0 }
  0xba   :  { %3248 = vmatprep.subr.bf16.mxu0 %v3247_v16 }
  0xbb   :  { %3246 = vmatpush1.bf16.msra.mxu1 %v3245_v5 }
  0xbc   :  { %2619 = vmatmul.mubr.msk.f32.vlgmr.msra.gmra.mrb[32].mxu0 %vm869_vm0, %v4452_v39  ;;  %3264 = vmatprep.subr.bf16.mxu1 %v3263_v7 }
  0xbd   :  { %3250 = vmatpush1.bf16.msra.mxu0 %v3249_v14  ;;  %2194 = vmatprep.mubr.f32.mxu0 %v3305_v17 }
  0xbe   :  { %2620 = vmatmul.mubr.msk.f32.vlgmr.msra.gmra.mrb[32].mxu1 %vm869_vm0, %v4452_v39  ;;  %3252 = vmatprep.subr.bf16.mxu0 %v3251_v12 }
  0xbf   :  { %3266 = vmatpush1.bf16.msra.mxu1 %v3265_v15  ;;  %2265 = vmatprep.mubr.f32.mxu1 %v3305_v17  ;;  %v2618_v17 = vld [vmem:[%s5254_s3 + $0x3f8] sm:$0xff] }
  0xc0   :  { %3268 = vmatprep.subr.bf16.mxu1 %v3267_v20  ;;  %v3275_v43 = vpack.c.bf16 %v2618_v17, %v2610_v41 }
  0xc1   :  { %3254 = vmatpush1.bf16.msra.mxu0 %v3253_v25 }
  0xc2   :  { %3256 = vmatprep.subr.bf16.mxu0 %v3255_v26 }
  0xc3   :  { %3270 = vmatpush1.bf16.msra.mxu1 %v3269_v28 }
  0xc4   :  { %3272 = vmatprep.subr.bf16.mxu1 %v3271_v30 }
  0xc5   :  { %3258 = vmatpush1.bf16.msra.mxu0 %v3257_v34 }
  0xc6   :  { %3260 = vmatprep.subr.bf16.mxu0 %v3259_v37 }
  0xc7   :  { %3274 = vmatpush1.bf16.msra.mxu1 %v3273_v42 }
  0xc8   :  { %3276 = vmatprep.subr.bf16.mxu1 %v3275_v43 }
  0xc9   :  { %3262 = vmatpush1.bf16.msra.mxu0 %v3261_v46 }
  0xcb   :  { %3278 = vmatpush1.bf16.msra.mxu1 %v3277_v47 }
  0xcc   :  { %2621 = vmatmul.mubr.msk.f32.vlgmr.msra.gmra.mrb[34].mxu0 %vm869_vm0, %v4452_v39 }
  0xce   :  { %2622 = vmatmul.mubr.msk.f32.vlgmr.msra.gmra.mrb[34].mxu1 %vm869_vm0, %v4452_v39 }
  0xff   :  { %v2663_v50 = vpop.f32.mrb[0].mxu0 }
 0x100   :  { %v2707_v51 = vpop.f32.mrb[0].mxu1  ;;  %v2664_v52 = vpop.f32.mrb[1].mxu0 }
 0x101   :  { %v2665_v53 = vadd.f32 %v2664_v52, %v2663_v50  ;;  %v2708_v54 = vpop.f32.mrb[1].mxu1 }
 0x102   :  { %v2709_v55 = vadd.f32 %v2708_v54, %v2707_v51 }
 0x103   :  { %v2666_v56 = vpop.f32.mrb[2].mxu0 }
 0x104   :  { %v289_v57 = vadd.f32 %v2709_v55, %v2665_v53  ;;  %v2710_v58 = vpop.f32.mrb[2].mxu1  ;;  %v2667_v59 = vpop.f32.mrb[3].mxu0 }
 0x105   :  { %v2668_v48 = vadd.f32 %v2667_v59, %v2666_v56  ;;  %v2711_v60 = vpop.f32.mrb[3].mxu1 }
 0x106   :  { %344 = vst.msk [vmem:[%s5257_s16] sm:$0xff] %vm307_vm1, %v289_v57  ;;  %v308_v39 = vsel %vm307_vm1, %v289_v57, 0.0  ;;  %v324_v61 = vmul.f32 %v289_v57, %v289_v57  ;;  %v2712_v49 = vadd.f32 %v2711_v60, %v2710_v58 }
 0x107   :  { %309 = vadd.xlane.f32.xlu0 %v308_v39  ;;  %v2669_v63 = vpop.f32.mrb[4].mxu0 }
 0x108   :  { %v294_v0 = vadd.f32 %v2712_v49, %v2668_v48  ;;  %v2713_v62 = vpop.f32.mrb[4].mxu1  ;;  %v2670_v3 = vpop.f32.mrb[5].mxu0  ;;  %v328_v4 = vsel %vm307_vm1, %v324_v61, 0.0 }
 0x109   :  { %v2671_v16 = vadd.f32 %v2670_v3, %v2669_v63  ;;  %v2714_v1 = vpop.f32.mrb[5].mxu1 }
 0x10a   :  { %345 = vst.msk [vmem:[%s5257_s16 + $0x8] sm:$0xff] %vm307_vm1, %v294_v0  ;;  %v2715_v5 = vadd.f32 %v2714_v1, %v2713_v62  ;;  %v325_v2 = vmul.f32 %v294_v0, %v294_v0  ;;  %v311_v10 = vsel %vm307_vm1, %v294_v0, 0.0 }
 0x10b   :  { %329 = vadd.xlane.f32.xlu0 %v328_v4  ;;  %v2672_v6 = vpop.f32.mrb[6].mxu0 }
 0x10c   :  { %v299_v7 = vadd.f32 %v2715_v5, %v2671_v16  ;;  %v331_v8 = vsel %vm307_vm1, %v325_v2, 0.0  ;;  %v2716_v9 = vpop.f32.mrb[6].mxu1  ;;  %v2673_v14 = vpop.f32.mrb[7].mxu0 }
 0x10d   :  { %332 = vadd.xlane.f32.xlu1 %v331_v8  ;;  %v2674_v11 = vadd.f32 %v2673_v14, %v2672_v6  ;;  %v2717_v12 = vpop.f32.mrb[7].mxu1 }
 0x10e   :  { %346 = vst.msk [vmem:[%s5257_s16 + $0x10] sm:$0xff] %vm307_vm1, %v299_v7  ;;  %v2718_v19 = vadd.f32 %v2717_v12, %v2716_v9  ;;  %v314_v13 = vsel %vm307_vm1, %v299_v7, 0.0  ;;  %v326_v15 = vmul.f32 %v299_v7, %v299_v7 }
 0x10f   :  { %312 = vadd.xlane.f32.xlu0 %v311_v10 }
 0x110   :  { %v304_v18 = vadd.f32 %v2718_v19, %v2674_v11  ;;  %v334_v21 = vsel %vm307_vm1, %v326_v15, 0.0 }
 0x111   :  { %315 = vadd.xlane.f32.xlu1 %v314_v13 }
 0x112   :  { %347 = vst.msk [vmem:[%s5257_s16 + $0x18] sm:$0xff] %vm307_vm1, %v304_v18  ;;  %v317_v20 = vsel %vm307_vm1, %v304_v18, 0.0  ;;  %v327_v22 = vmul.f32 %v304_v18, %v304_v18 }
 0x113   :  { %335 = vadd.xlane.f32.xlu0 %v334_v21 }
 0x114   :  { %v337_v23 = vsel %vm307_vm1, %v327_v22, 0.0 }
 0x115   :  { %318 = vadd.xlane.f32.xlu1 %v317_v20 }
 0x119   :  { %338 = vadd.xlane.f32.xlu1 %v337_v23 }
 0x11f   :  { %v2751_v25 = vpop.f32.mrb[8].mxu0 }
 0x120   :  { %v2795_v32 = vpop.f32.mrb[8].mxu1  ;;  %v2752_v24 = vpop.f32.mrb[9].mxu0 }
 0x121   :  { %v2753_v26 = vadd.f32 %v2752_v24, %v2751_v25  ;;  %v2796_v35 = vpop.f32.mrb[9].mxu1 }
 0x122   :  { %v2797_v27 = vadd.f32 %v2796_v35, %v2795_v32 }
 0x123   :  { %v2754_v28 = vpop.f32.mrb[10].mxu0 }
 0x124   :  { %v565_v29 = vadd.f32 %v2797_v27, %v2753_v26  ;;  %v2798_v36 = vpop.f32.mrb[10].mxu1  ;;  %v2755_v30 = vpop.f32.mrb[11].mxu0 }
 0x125   :  { %v2756_v31 = vadd.f32 %v2755_v30, %v2754_v28  ;;  %v2799_v33 = vpop.f32.mrb[11].mxu1 }
 0x126   :  { %2475 = vst.msk [vmem:[%s5257_s16 + $0x20] sm:$0xff] %vm307_vm1, %v565_v29  ;;  %v2800_v34 = vadd.f32 %v2799_v33, %v2798_v36  ;;  %v583_v41 = vsel %vm307_vm1, %v565_v29, 0.0  ;;  %v599_v17 = vmul.f32 %v565_v29, %v565_v29 }
 0x127   :  { %584 = vadd.xlane.f32.xlu0 %v583_v41  ;;  %v2757_v37 = vpop.f32.mrb[12].mxu0 }
 0x128   :  { %v570_v38 = vadd.f32 %v2800_v34, %v2756_v31  ;;  %v2801_v40 = vpop.f32.mrb[12].mxu1  ;;  %v2758_v42 = vpop.f32.mrb[13].mxu0  ;;  %v603_v47 = vsel %vm307_vm1, %v599_v17, 0.0  ;;  %v3306_v17 = vmov 0  }
 0x129   :  { %v2759_v43 = vadd.f32 %v2758_v42, %v2757_v37  ;;  %v2802_v44 = vpop.f32.mrb[13].mxu1  ;;  %3281 = vset.pattern.permute.xlu0 %v3306_v17  ;;  %3282 = vset.pattern.permute.xlu1 %v3306_v17 }
 0x12a   :  { %2476 = vst.msk [vmem:[%s5257_s16 + $0x28] sm:$0xff] %vm307_vm1, %v570_v38  ;;  %v2803_v45 = vadd.f32 %v2802_v44, %v2801_v40  ;;  %v586_v46 = vsel %vm307_vm1, %v570_v38, 0.0  ;;  %v600_v50 = vmul.f32 %v570_v38, %v570_v38 }
 0x12b   :  { %587 = vadd.xlane.f32.xlu1 %v586_v46  ;;  %604 = vadd.xlane.f32.xlu0 %v603_v47  ;;  %v2760_v51 = vpop.f32.mrb[14].mxu0 }
 0x12c   :  { %v575_v52 = vadd.f32 %v2803_v45, %v2759_v43  ;;  %v2804_v53 = vpop.f32.mrb[14].mxu1  ;;  %v2761_v54 = vpop.f32.mrb[15].mxu0  ;;  %v606_v55 = vsel %vm307_vm1, %v600_v50, 0.0 }
 0x12d   :  { %v2762_v56 = vadd.f32 %v2761_v54, %v2760_v51  ;;  %v2805_v57 = vpop.f32.mrb[15].mxu1 }
 0x12e   :  { %2477 = vst.msk [vmem:[%s5257_s16 + $0x30] sm:$0xff] %vm307_vm1, %v575_v52  ;;  %v2806_v58 = vadd.f32 %v2805_v57, %v2804_v53  ;;  %v589_v59 = vsel %vm307_vm1, %v575_v52, 0.0  ;;  %v601_v48 = vmul.f32 %v575_v52, %v575_v52 }
 0x12f   :  { %607 = vadd.xlane.f32.xlu1 %v606_v55  ;;  %590 = vadd.xlane.f32.xlu0 %v589_v59 }
 0x130   :  { %v580_v60 = vadd.f32 %v2806_v58, %v2762_v56  ;;  %v609_v39 = vsel %vm307_vm1, %v601_v48, 0.0 }
 0x132   :  { %2478 = vst.msk [vmem:[%s5257_s16 + $0x38] sm:$0xff] %vm307_vm1, %v580_v60  ;;  %v592_v61 = vsel %vm307_vm1, %v580_v60, 0.0  ;;  %v602_v49 = vmul.f32 %v580_v60, %v580_v60 }
 0x133   :  { %593 = vadd.xlane.f32.xlu1 %v592_v61  ;;  %610 = vadd.xlane.f32.xlu0 %v609_v39 }
 0x134   :  { %v612_v63 = vsel %vm307_vm1, %v602_v49, 0.0 }
 0x137   :  { %613 = vadd.xlane.f32.xlu1 %v612_v63 }
 0x13f   :  { %v2839_v0 = vpop.f32.mrb[16].mxu0 }
 0x140   :  { %v2883_v62 = vpop.f32.mrb[16].mxu1  ;;  %v2840_v3 = vpop.f32.mrb[17].mxu0 }
 0x141   :  { %v2841_v16 = vadd.f32 %v2840_v3, %v2839_v0  ;;  %v2884_v1 = vpop.f32.mrb[17].mxu1 }
 0x142   :  { %v2885_v4 = vadd.f32 %v2884_v1, %v2883_v62 }
 0x143   :  { %906 = vst.msk [vmem:[%s5258_s17] sm:$0xff] %vm869_vm0, %v2841_v16  ;;  %v870_v5 = vsel %vm869_vm0, %v2841_v16, 0.0  ;;  %v2842_v2 = vpop.f32.mrb[18].mxu0  ;;  %v886_v9 = vmul.f32 %v2841_v16, %v2841_v16 }
 0x144   :  { %2511 = vst.msk [vmem:[%s5258_s17 + $0x20] sm:$0xff] %vm869_vm0, %v2885_v4  ;;  %v2886_v6 = vpop.f32.mrb[18].mxu1  ;;  %871 = vadd.xlane.f32.xlu1 %v870_v5  ;;  %v1028_v7 = vsel %vm869_vm0, %v2885_v4, 0.0  ;;  %v2843_v8 = vpop.f32.mrb[19].mxu0  ;;  %v1044_v18 = vmul.f32 %v2885_v4, %v2885_v4 }
 0x145   :  { %v2887_v14 = vpop.f32.mrb[19].mxu1  ;;  %1029 = vadd.xlane.f32.xlu0 %v1028_v7  ;;  %v2844_v10 = vadd.f32 %v2843_v8, %v2842_v2  ;;  %v890_v15 = vsel %vm869_vm0, %v886_v9, 0.0 }
 0x146   :  { %v2888_v11 = vadd.f32 %v2887_v14, %v2886_v6  ;;  %v1048_v35 = vsel %vm869_vm0, %v1044_v18, 0.0 }
 0x147   :  { %907 = vst.msk [vmem:[%s5258_s17 + $0x8] sm:$0xff] %vm869_vm0, %v2844_v10  ;;  %v887_v12 = vmul.f32 %v2844_v10, %v2844_v10  ;;  %v2845_v19 = vpop.f32.mrb[20].mxu0  ;;  %v873_v30 = vsel %vm869_vm0, %v2844_v10, 0.0 }
 0x148   :  { %2512 = vst.msk [vmem:[%s5258_s17 + $0x28] sm:$0xff] %vm869_vm0, %v2888_v11  ;;  %v1031_v13 = vsel %vm869_vm0, %v2888_v11, 0.0  ;;  %v2846_v21 = vpop.f32.mrb[21].mxu0  ;;  %v1045_v25 = vmul.f32 %v2888_v11, %v2888_v11 }
 0x149   :  { %1032 = vadd.xlane.f32.xlu1 %v1031_v13  ;;  %891 = vadd.xlane.f32.xlu0 %v890_v15  ;;  %v2847_v20 = vadd.f32 %v2846_v21, %v2845_v19  ;;  %v2889_v22 = vpop.f32.mrb[20].mxu1  ;;  %v893_v23 = vsel %vm869_vm0, %v887_v12, 0.0 }
 0x14a   :  { %v2890_v32 = vpop.f32.mrb[21].mxu1  ;;  %v1051_v36 = vsel %vm869_vm0, %v1045_v25, 0.0 }
 0x14b   :  { %908 = vst.msk [vmem:[%s5258_s17 + $0x10] sm:$0xff] %vm869_vm0, %v2847_v20  ;;  %v2848_v24 = vpop.f32.mrb[22].mxu0  ;;  %v2891_v26 = vadd.f32 %v2890_v32, %v2889_v22  ;;  %v876_v41 = vsel %vm869_vm0, %v2847_v20, 0.0  ;;  %v888_v42 = vmul.f32 %v2847_v20, %v2847_v20 }
 0x14c   :  { %v2849_v27 = vpop.f32.mrb[23].mxu0 }
 0x14d   :  { %894 = vadd.xlane.f32.xlu1 %v893_v23  ;;  %1049 = vadd.xlane.f32.xlu0 %v1048_v35  ;;  %v2850_v28 = vadd.f32 %v2849_v27, %v2848_v24  ;;  %2513 = vst.msk [vmem:[%s5258_s17 + $0x30] sm:$0xff] %vm869_vm0, %v2891_v26  ;;  %v2892_v29 = vpop.f32.mrb[22].mxu1  ;;  %v1034_v38 = vsel %vm869_vm0, %v2891_v26, 0.0  ;;  %v896_v44 = vsel %vm869_vm0, %v888_v42, 0.0  ;;  %v1046_v46 = vmul.f32 %v2891_v26, %v2891_v26 }
 0x14e   :  { %v2893_v31 = vpop.f32.mrb[23].mxu1 }
 0x14f   :  { %909 = vst.msk [vmem:[%s5258_s17 + $0x18] sm:$0xff] %vm869_vm0, %v2850_v28  ;;  %v2894_v33 = vadd.f32 %v2893_v31, %v2892_v29  ;;  %v879_v34 = vsel %vm869_vm0, %v2850_v28, 0.0  ;;  %v889_v40 = vmul.f32 %v2850_v28, %v2850_v28  ;;  %v1054_v50 = vsel %vm869_vm0, %v1046_v46, 0.0 }
 0x151   :  { %1052 = vadd.xlane.f32.xlu1 %v1051_v36  ;;  %874 = vadd.xlane.f32.xlu0 %v873_v30  ;;  %2514 = vst.msk [vmem:[%s5258_s17 + $0x38] sm:$0xff] %vm869_vm0, %v2894_v33  ;;  %v1037_v37 = vsel %vm869_vm0, %v2894_v33, 0.0  ;;  %v899_v43 = vsel %vm869_vm0, %v889_v40, 0.0  ;;  %v1047_v45 = vmul.f32 %v2894_v33, %v2894_v33 }
 0x153   :  { %v1057_v47 = vsel %vm869_vm0, %v1047_v45, 0.0 }
 0x155   :  { %880 = vadd.xlane.f32.xlu1 %v879_v34  ;;  %877 = vadd.xlane.f32.xlu0 %v876_v41 }
 0x159   :  { %1038 = vadd.xlane.f32.xlu1 %v1037_v37  ;;  %1035 = vadd.xlane.f32.xlu0 %v1034_v38 }
 0x15d   :  { %900 = vadd.xlane.f32.xlu1 %v899_v43  ;;  %897 = vadd.xlane.f32.xlu0 %v896_v44 }
 0x15f   :  { %v4830_v51 = vpop.f32.mrb[24].mxu0 }
 0x160   :  { %v4832_v52 = vpop.f32.mrb[25].mxu0  ;;  %v1308_v53 = vmul.f32 %v4830_v51, %v4830_v51 }
 0x161   :  { %1058 = vadd.xlane.f32.xlu1 %v1057_v47  ;;  %1055 = vadd.xlane.f32.xlu0 %v1054_v50  ;;  %v4836_v54 = vpop.f32.mrb[24].mxu1  ;;  %v1300_v55 = vadd.f32 %v4832_v52, %v4830_v51  ;;  %v1309_v56 = vmul.f32 %v4832_v52, %v4832_v52 }
 0x162   :  { %v4842_v57 = vpop.f32.mrb[25].mxu1  ;;  %v1442_v58 = vmul.f32 %v4836_v54, %v4836_v54 }
 0x163   :  { %v1312_v59 = vadd.f32 %v1309_v56, %v1308_v53  ;;  %v4846_v48 = vpop.f32.mrb[26].mxu0  ;;  %v1434_v60 = vadd.f32 %v4842_v57, %v4836_v54  ;;  %v1443_v39 = vmul.f32 %v4842_v57, %v4842_v57 }
 0x164   :  { %v4852_v61 = vpop.f32.mrb[27].mxu0  ;;  %v1310_v49 = vmul.f32 %v4846_v48, %v4846_v48 }
 0x165   :  { %1301 = vadd.xlane.f32.xlu1 %v1300_v55  ;;  %1313 = vadd.xlane.f32.xlu0 %v1312_v59  ;;  %v1446_v63 = vadd.f32 %v1443_v39, %v1442_v58  ;;  %v4856_v0 = vpop.f32.mrb[26].mxu1  ;;  %v1311_v62 = vmul.f32 %v4852_v61, %v4852_v61  ;;  %v1303_v3 = vadd.f32 %v4852_v61, %v4846_v48 }
 0x166   :  { %v4862_v16 = vpop.f32.mrb[27].mxu1  ;;  %v1444_v1 = vmul.f32 %v4856_v0, %v4856_v0 }
 0x167   :  { %v1315_v4 = vadd.f32 %v1311_v62, %v1310_v49  ;;  %v1445_v5 = vmul.f32 %v4862_v16, %v4862_v16  ;;  %v1437_v2 = vadd.f32 %v4862_v16, %v4856_v0 }
 0x169   :  { %1435 = vadd.xlane.f32.xlu1 %v1434_v60  ;;  %1447 = vadd.xlane.f32.xlu0 %v1446_v63  ;;  %v1449_v6 = vadd.f32 %v1445_v5, %v1444_v1 }
 0x16d   :  { %1316 = vadd.xlane.f32.xlu1 %v1315_v4  ;;  %1304 = vadd.xlane.f32.xlu0 %v1303_v3 }
 0x16f   :  { %v4870_v7 = vpop.f32.mrb[28].mxu0 }
 0x170   :  { %v1897_v8 = vmul.f32 %v4870_v7, %v4870_v7  ;;  %v4874_v9 = vpop.f32.mrb[29].mxu0 }
 0x171   :  { %v1887_v14 = vadd.f32 %v4874_v9, %v4870_v7  ;;  %v1898_v10 = vmul.f32 %v4874_v9, %v4874_v9  ;;  %1450 = vadd.xlane.f32.xlu1 %v1449_v6  ;;  %1438 = vadd.xlane.f32.xlu0 %v1437_v2  ;;  %v4880_v11 = vpop.f32.mrb[28].mxu1 }
 0x172   :  { %v1899_v12 = vmul.f32 %v4880_v11, %v4880_v11  ;;  %v4884_v19 = vpop.f32.mrb[29].mxu1 }
 0x173   :  { %v1905_v13 = vadd.f32 %v1898_v10, %v1897_v8  ;;  %v1888_v15 = vadd.f32 %v1887_v14, %v4880_v11  ;;  %v1900_v18 = vmul.f32 %v4884_v19, %v4884_v19 }
 0x175   :  { %v1906_v21 = vadd.f32 %v1905_v13, %v1899_v12  ;;  %v1889_v20 = vadd.f32 %v1888_v15, %v4884_v19 }
 0x177   :  { %v1907_v22 = vadd.f32 %v1906_v21, %v1900_v18 }
 0x17f   :  { %v4890_v23 = vpop.f32.mrb[30].mxu0 }
 0x180   :  { %v1890_v25 = vadd.f32 %v1889_v20, %v4890_v23  ;;  %v1901_v32 = vmul.f32 %v4890_v23, %v4890_v23  ;;  %v4895_v24 = vpop.f32.mrb[31].mxu0 }
 0x181   :  { %v1902_v26 = vmul.f32 %v4895_v24, %v4895_v24  ;;  %v4899_v35 = vpop.f32.mrb[30].mxu1 }
 0x182   :  { %v1908_v27 = vadd.f32 %v1907_v22, %v1901_v32  ;;  %v1891_v28 = vadd.f32 %v1890_v25, %v4895_v24  ;;  %v1903_v29 = vmul.f32 %v4899_v35, %v4899_v35  ;;  %v4904_v36 = vpop.f32.mrb[31].mxu1 }
 0x183   :  { %v1904_v31 = vmul.f32 %v4904_v36, %v4904_v36 }
 0x184   :  { %v1892_v30 = vadd.f32 %v1891_v28, %v4899_v35  ;;  %v1909_v33 = vadd.f32 %v1908_v27, %v1902_v26 }
 0x186   :  { %v1893_v34 = vadd.f32 %v1892_v30, %v4904_v36  ;;  %v1910_v41 = vadd.f32 %v1909_v33, %v1903_v29 }
 0x188   :  { %1894 = vadd.xlane.f32.xlu1 %v1893_v34  ;;  %v1911_v17 = vadd.f32 %v1910_v41, %v1904_v31 }
 0x18f   :  { %v4910_v37 = vpop.f32.mrb[32].mxu0 }
 0x190   :  { %v2282_v38 = vmul.f32 %v4910_v37, %v4910_v37  ;;  %v4914_v40 = vpop.f32.mrb[33].mxu0 }
 0x191   :  { %v2272_v42 = vadd.f32 %v4914_v40, %v4910_v37  ;;  %v2283_v43 = vmul.f32 %v4914_v40, %v4914_v40  ;;  %v4920_v44 = vpop.f32.mrb[32].mxu1 }
 0x192   :  { %v2284_v45 = vmul.f32 %v4920_v44, %v4920_v44  ;;  %v4924_v46 = vpop.f32.mrb[33].mxu1 }
 0x193   :  { %v2290_v47 = vadd.f32 %v2283_v43, %v2282_v38  ;;  %v2273_v50 = vadd.f32 %v2272_v42, %v4920_v44  ;;  %v2285_v53 = vmul.f32 %v4924_v46, %v4924_v46 }
 0x194   :  { %v310_v63 = vpop.xlane.xlu0 %309 }
 0x195   :  { %v2291_v55 = vadd.f32 %v2290_v47, %v2284_v45  ;;  %v2274_v56 = vadd.f32 %v2273_v50, %v4924_v46 }
 0x197   :  { %v2292_v58 = vadd.f32 %v2291_v55, %v2285_v53 }
 0x198   :  { %v330_v15 = vpop.xlane.xlu0 %329 }
 0x19a   :  { %v333_v6 = vpop.xlane.xlu1 %332 }
 0x19c   :  { %v313_v20 = vpop.xlane.xlu0 %312 }
 0x19e   :  { %v316_v18 = vpop.xlane.xlu1 %315 }
 0x19f   :  { %v4930_v59 = vpop.f32.mrb[34].mxu0 }
 0x1a0   :  { %v2275_v60 = vadd.f32 %v2274_v56, %v4930_v59  ;;  %v2286_v39 = vmul.f32 %v4930_v59, %v4930_v59  ;;  %v4935_v49 = vpop.f32.mrb[35].mxu0  ;;  %v336_v25 = vpop.xlane.xlu0 %335 }
 0x1a1   :  { %v2287_v62 = vmul.f32 %v4935_v49, %v4935_v49  ;;  %v4939_v3 = vpop.f32.mrb[34].mxu1 }
 0x1a2   :  { %v2293_v1 = vadd.f32 %v2292_v58, %v2286_v39  ;;  %v2276_v4 = vadd.f32 %v2275_v60, %v4935_v49  ;;  %v2288_v5 = vmul.f32 %v4939_v3, %v4939_v3  ;;  %v4944_v2 = vpop.f32.mrb[35].mxu1  ;;  %v319_v22 = vpop.xlane.xlu1 %318 }
 0x1a3   :  { %v2289_v10 = vmul.f32 %v4944_v2, %v4944_v2 }
 0x1a4   :  { %v2294_v8 = vadd.f32 %v2293_v1, %v2287_v62  ;;  %v2277_v14 = vadd.f32 %v2276_v4, %v4939_v3 }
 0x1a6   :  { %v2278_v12 = vadd.f32 %v2277_v14, %v4944_v2  ;;  %v2295_v13 = vadd.f32 %v2294_v8, %v2288_v5  ;;  %v339_v32 = vpop.xlane.xlu1 %338 }
 0x1a8   :  { %2279 = vadd.xlane.f32.xlu0 %v2278_v12  ;;  %v2296_v21 = vadd.f32 %v2295_v13, %v2289_v10 }
 0x1aa   :  { %2297 = vadd.xlane.f32.xlu1 %v2296_v21 }
 0x1ac   :  { %1912 = vadd.xlane.f32.xlu0 %v1911_v17 }
 0x1b4   :  { %v585_v26 = vpop.xlane.xlu0 %584 }
 0x1b5   :  { %v595_v27 = vadd.f32 %v585_v26, %v310_v63 }
 0x1b7   :  { %v624_v28 = vmul.f32 0.03125, %v595_v27 }
 0x1b8   :  { %v588_v29 = vpop.xlane.xlu1 %587  ;;  %v605_v30 = vpop.xlane.xlu0 %604 }
 0x1b9   :  { %v596_v31 = vadd.f32 %v588_v29, %v313_v20  ;;  %v615_v33 = vadd.f32 %v605_v30, %v330_v15  ;;  %v632_v34 = vmul.f32 %v624_v28, %v624_v28 }
 0x1bb   :  { %v625_v41 = vmul.f32 0.03125, %v596_v31  ;;  %v628_v38 = vmul.f32 0.03125, %v615_v33 }
 0x1bc   :  { %v608_v42 = vpop.xlane.xlu1 %607  ;;  %v591_v43 = vpop.xlane.xlu0 %590 }
 0x1bd   :  { %v636_v45 = vsub.f32 %v628_v38, %v632_v34  ;;  %v616_v47 = vadd.f32 %v608_v42, %v333_v6  ;;  %v597_v50 = vadd.f32 %v591_v43, %v316_v18  ;;  %v633_v53 = vmul.f32 %v625_v41, %v625_v41  ;;  %v660_v43 = vld [vmem:[%s5260_s12] sm:$0xff] }
 0x1bf   :  { %v640_v17 = vmax.f32 %v636_v45, 0.0  ;;  %v629_v55 = vmul.f32 0.03125, %v616_v47  ;;  %v4950_v56 = vmul.f32 0.03125, %v597_v50 }
 0x1c0   :  { %v594_v58 = vpop.xlane.xlu1 %593  ;;  %v611_v60 = vpop.xlane.xlu0 %610 }
 0x1c1   :  { %v648_v39 = vadd.f32 1e-05, %v640_v17  ;;  %v637_v63 = vsub.f32 %v629_v55, %v633_v53  ;;  %v598_v62 = vadd.f32 %v594_v58, %v319_v22  ;;  %v617_v1 = vadd.f32 %v611_v60, %v336_v25  ;;  %v644_v25 = vld [vmem:[%s5259_s8] sm:$0xff]  ;;  %v646_v55 = vld [vmem:[%s5259_s8 + $0x10] sm:$0xff] }
 0x1c2   :  { %v634_v8 = vmul.f32 %v4950_v56, %v4950_v56 }
 0x1c3   :  { %3283 = vrsqrt.f32 %v648_v39  ;;  %v641_v4 = vmax.f32 %v637_v63, 0.0  ;;  %v4952_v5 = vmul.f32 0.03125, %v598_v62  ;;  %v630_v6 = vmul.f32 0.03125, %v617_v1  ;;  %v661_v1 = vld [vmem:[%s5260_s12 + $0x8] sm:$0xff] }
 0x1c4   :  { %v614_v14 = vpop.xlane.xlu1 %613 }
 0x1c5   :  { %v649_v10 = vadd.f32 1e-05, %v641_v4  ;;  %v618_v12 = vadd.f32 %v614_v14, %v339_v32  ;;  %v638_v13 = vsub.f32 %v630_v6, %v634_v8  ;;  %v635_v15 = vmul.f32 %v4952_v5, %v4952_v5  ;;  %v645_v32 = vld [vmem:[%s5259_s8 + $0x8] sm:$0xff] }
 0x1c7   :  { %3285 = vrsqrt.f32 %v649_v10  ;;  %v631_v18 = vmul.f32 0.03125, %v618_v12  ;;  %v642_v21 = vmax.f32 %v638_v13, 0.0 }
 0x1c9   :  { %v639_v20 = vsub.f32 %v631_v18, %v635_v15  ;;  %v650_v22 = vadd.f32 1e-05, %v642_v21 }
 0x1cb   :  { %3287 = vrsqrt.f32 %v650_v22  ;;  %v643_v27 = vmax.f32 %v639_v20, 0.0 }
 0x1cd   :  { %v3284_v26 = vpop.eup %3283  ;;  %v651_v31 = vadd.f32 1e-05, %v643_v27 }
 0x1ce   :  { %v656_v29 = vmul.f32 %v3284_v26, %v644_v25 }
 0x1cf   :  { %3289 = vrsqrt.f32 %v651_v31  ;;  %v662_v31 = vld [vmem:[%s5260_s12 + $0x10] sm:$0xff] }
 0x1d0   :  { %682 = vperm.xlu0 %3281, %v656_v29   ;;  %v664_v42 = vmul.f32 %v656_v29, %v624_v28 }
 0x1d1   :  { %v3286_v30 = vpop.eup %3285  ;;  %v872_v33 = vpop.xlane.xlu1 %871 }
 0x1d2   :  { %v1030_v34 = vpop.xlane.xlu0 %1029  ;;  %v657_v38 = vmul.f32 %v3286_v30, %v645_v32  ;;  %v668_v53 = vsub.f32 %v660_v43, %v664_v42 }
 0x1d3   :  { %v1040_v45 = vadd.f32 %v1030_v34, %v872_v33 }
 0x1d4   :  { %687 = vperm.xlu1 %3282, %v657_v38   ;;  %v665_v63 = vmul.f32 %v657_v38, %v625_v41  ;;  %v647_v41 = vld [vmem:[%s5259_s8 + $0x18] sm:$0xff] }
 0x1d5   :  { %v3288_v17 = vpop.eup %3287  ;;  %v4970_v58 = vmul.f32 0.0078125, %v1040_v45 }
 0x1d6   :  { %v1033_v47 = vpop.xlane.xlu1 %1032  ;;  %v892_v50 = vpop.xlane.xlu0 %891  ;;  %v658_v39 = vmul.f32 %v3288_v17, %v646_v55  ;;  %v669_v10 = vsub.f32 %v661_v1, %v665_v63 }
 0x1d7   :  { %v1077_v4 = vmul.f32 %v4970_v58, %v4970_v58 }
 0x1d8   :  { %710 = vperm.xlu1 %3282, %v668_v53   ;;  %v666_v29 = vmul.f32 %v658_v39, %v4950_v56  ;;  %v663_v56 = vld [vmem:[%s5260_s12 + $0x18] sm:$0xff] }
 0x1d9   :  { %v3290_v12 = vpop.eup %3289 }
 0x1da   :  { %v895_v60 = vpop.xlane.xlu1 %894  ;;  %v1050_v28 = vpop.xlane.xlu0 %1049  ;;  %v659_v27 = vmul.f32 %v3290_v12, %v647_v41  ;;  %v670_v42 = vsub.f32 %v662_v31, %v666_v29  ;;  %v1090_v41 = vld [vmem:[%s5261_s9 + $0x8] sm:$0xff] }
 0x1db   :  { %v1060_v62 = vadd.f32 %v1050_v28, %v892_v50 }
 0x1dc   :  { %692 = vperm.xlu1 %3282, %v658_v39   ;;  %v667_v43 = vmul.f32 %v659_v27, %v4952_v5  ;;  %v1089_v5 = vld [vmem:[%s5261_s9] sm:$0xff] }
 0x1dd   :  { %v1073_v8 = vmul.f32 0.0078125, %v1060_v62 }
 0x1de   :  { %v1053_v6 = vpop.xlane.xlu1 %1052  ;;  %v875_v14 = vpop.xlane.xlu0 %874 }
 0x1df   :  { %v1081_v13 = vsub.f32 %v1073_v8, %v1077_v4  ;;  %v1061_v15 = vadd.f32 %v1053_v6, %v895_v60  ;;  %v1041_v18 = vadd.f32 %v1033_v47, %v875_v14  ;;  %v671_v60 = vsub.f32 %v663_v56, %v667_v43  ;;  %v1105_v43 = vld [vmem:[%s5262_s13] sm:$0xff] }
 0x1e0   :  { %715 = vperm.xlu1 %3282, %v669_v10  }
 0x1e1   :  { %v1085_v21 = vmax.f32 %v1081_v13, 0.0  ;;  %v1074_v20 = vmul.f32 0.0078125, %v1061_v15  ;;  %v1070_v22 = vmul.f32 0.0078125, %v1041_v18 }
 0x1e2   :  { %v881_v25 = vpop.xlane.xlu1 %880  ;;  %v878_v26 = vpop.xlane.xlu0 %877 }
 0x1e3   :  { %v1093_v32 = vadd.f32 1e-05, %v1085_v21  ;;  %v1078_v30 = vmul.f32 %v1070_v22, %v1070_v22 }
 0x1e4   :  { %697 = vperm.xlu1 %3282, %v659_v27  }
 0x1e5   :  { %3291 = vrsqrt.f32 %v1093_v32  ;;  %v1082_v33 = vsub.f32 %v1074_v20, %v1078_v30 }
 0x1e6   :  { %v1039_v34 = vpop.xlane.xlu1 %1038  ;;  %v1036_v38 = vpop.xlane.xlu0 %1035 }
 0x1e7   :  { %v1086_v45 = vmax.f32 %v1082_v33, 0.0  ;;  %v1043_v47 = vadd.f32 %v1039_v34, %v881_v25  ;;  %v1042_v53 = vadd.f32 %v1036_v38, %v878_v26 }
 0x1e8   :  { %720 = vperm.xlu1 %3282, %v670_v42  }
 0x1e9   :  { %v1094_v50 = vadd.f32 1e-05, %v1086_v45  ;;  %v4988_v28 = vmul.f32 0.0078125, %v1043_v47  ;;  %v4990_v39 = vmul.f32 0.0078125, %v1042_v53  ;;  %v1106_v45 = vld [vmem:[%s5262_s13 + $0x8] sm:$0xff] }
 0x1ea   :  { %v901_v17 = vpop.xlane.xlu1 %900  ;;  %v898_v55 = vpop.xlane.xlu0 %897 }
 0x1eb   :  { %3293 = vrsqrt.f32 %v1094_v50  ;;  %v1080_v4 = vmul.f32 %v4988_v28, %v4988_v28  ;;  %v1079_v10 = vmul.f32 %v4990_v39, %v4990_v39 }
 0x1ec   :  { %725 = vperm.xlu1 %3282, %v671_v60  }
 0x1ee   :  { %v1059_v63 = vpop.xlane.xlu1 %1058  ;;  %v1056_v62 = vpop.xlane.xlu0 %1055 }
 0x1ef   :  { %v3292_v1 = vpop.eup %3291  ;;  %v1063_v8 = vadd.f32 %v1059_v63, %v901_v17  ;;  %v1062_v6 = vadd.f32 %v1056_v62, %v898_v55 }
 0x1f0   :  { %v1101_v14 = vmul.f32 %v3292_v1, %v1089_v5 }
 0x1f1   :  { %v1076_v12 = vmul.f32 0.0078125, %v1063_v8  ;;  %v1075_v13 = vmul.f32 0.0078125, %v1062_v6 }
 0x1f2   :  { %v1302_v15 = vpop.xlane.xlu1 %1301  ;;  %1127 = vperm.xlu0 %3281, %v1101_v14   ;;  %v1314_v18 = vpop.xlane.xlu0 %1313  ;;  %v1109_v31 = vmul.f32 %v1101_v14, %v4970_v58  ;;  %v1092_v14 = vld [vmem:[%s5261_s9 + $0x18] sm:$0xff] }
 0x1f3   :  { %v1084_v21 = vsub.f32 %v1076_v12, %v1080_v4  ;;  %v1083_v20 = vsub.f32 %v1075_v13, %v1079_v10  ;;  %v1091_v10 = vld [vmem:[%s5261_s9 + $0x10] sm:$0xff] }
 0x1f4   :  { %v1113_v17 = vsub.f32 %v1105_v43, %v1109_v31 }
 0x1f5   :  { %v3294_v25 = vpop.eup %3293  ;;  %v1088_v26 = vmax.f32 %v1084_v21, 0.0  ;;  %v1087_v27 = vmax.f32 %v1083_v20, 0.0 }
 0x1f6   :  { %v1102_v29 = vmul.f32 %v3294_v25, %v1090_v41  ;;  %v1436_v32 = vpop.xlane.xlu1 %1435  ;;  %v1448_v30 = vpop.xlane.xlu0 %1447  ;;  %v1108_v25 = vld [vmem:[%s5262_s13 + $0x18] sm:$0xff] }
 0x1f7   :  { %v1096_v33 = vadd.f32 1e-05, %v1088_v26  ;;  %v1095_v34 = vadd.f32 1e-05, %v1087_v27  ;;  %v1440_v38 = vadd.f32 %v1436_v32, %v1302_v15  ;;  %v1452_v42 = vadd.f32 %v1448_v30, %v1314_v18  ;;  %v1107_v27 = vld [vmem:[%s5262_s13 + $0x10] sm:$0xff] }
 0x1f8   :  { %v1110_v47 = vmul.f32 %v1102_v29, %v1070_v22  ;;  %1132 = vperm.xlu1 %3282, %v1102_v29  }
 0x1f9   :  { %3295 = vrsqrt.f32 %v1096_v33  ;;  %v1459_v56 = vmul.f32 0.001953125, %v1440_v38  ;;  %v1461_v50 = vmul.f32 0.001953125, %v1452_v42  ;;  %v1477_v42 = vld [vmem:[%s5264_s14] sm:$0xff] }
 0x1fa   :  { %3297 = vrsqrt.f32 %v1095_v34  ;;  %v1317_v53 = vpop.xlane.xlu1 %1316  ;;  %v1305_v58 = vpop.xlane.xlu0 %1304  ;;  %v1114_v55 = vsub.f32 %v1106_v45, %v1110_v47  ;;  %v1469_v34 = vld [vmem:[%s5263_s10] sm:$0xff] }
 0x1fb   :  { %v1463_v60 = vmul.f32 %v1459_v56, %v1459_v56 }
 0x1fc   :  { %1155 = vperm.xlu1 %3282, %v1113_v17   ;;  %1160 = vperm.xlu0 %3281, %v1114_v55  }
 0x1fd   :  { %v1465_v5 = vsub.f32 %v1461_v50, %v1463_v60 }
 0x1fe   :  { %v1451_v63 = vpop.xlane.xlu1 %1450  ;;  %v1439_v62 = vpop.xlane.xlu0 %1438 }
 0x1ff   :  { %v1467_v1 = vmax.f32 %v1465_v5, 0.0  ;;  %v1453_v4 = vadd.f32 %v1451_v63, %v1317_v53  ;;  %v1441_v8 = vadd.f32 %v1439_v62, %v1305_v58  ;;  %v1478_v53 = vld [vmem:[%s5264_s14 + $0x8] sm:$0xff] }
 0x201   :  { %v1471_v6 = vadd.f32 1e-05, %v1467_v1  ;;  %v1460_v22 = vmul.f32 0.001953125, %v1441_v8  ;;  %v1462_v13 = vmul.f32 0.001953125, %v1453_v4 }
 0x203   :  { %v3296_v12 = vpop.eup %3295  ;;  %3299 = vrsqrt.f32 %v1471_v6  ;;  %v1464_v15 = vmul.f32 %v1460_v22, %v1460_v22 }
 0x204   :  { %v3298_v18 = vpop.eup %3297  ;;  %v1104_v41 = vmul.f32 %v3296_v12, %v1092_v14 }
 0x205   :  { %v1466_v21 = vsub.f32 %v1462_v13, %v1464_v15  ;;  %v1103_v20 = vmul.f32 %v3298_v18, %v1091_v10  ;;  %v2318_v15 = vld [vmem:[%s5266_s15] sm:$0xff] }
 0x206   :  { %1142 = vperm.xlu0 %3281, %v1104_v41   ;;  %v1112_v26 = vmul.f32 %v1104_v41, %v4988_v28 }
 0x207   :  { %v1468_v29 = vmax.f32 %v1466_v21, 0.0  ;;  %1137 = vperm.xlu1 %3282, %v1103_v20   ;;  %v1111_v32 = vmul.f32 %v1103_v20, %v4990_v39  ;;  %v1470_v39 = vld [vmem:[%s5263_s10 + $0x8] sm:$0xff] }
 0x208   :  { %v1116_v30 = vsub.f32 %v1108_v25, %v1112_v26  ;;  %v672_v25 = vld [vmem:[%s5257_s16] sm:$0xff] }
 0x209   :  { %v1472_v31 = vadd.f32 1e-05, %v1468_v29  ;;  %v1115_v33 = vsub.f32 %v1107_v27, %v1111_v32  ;;  %v676_v26 = vld [vmem:[%s5257_s16 + $0x20] sm:$0xff] }
 0x20a   :  { %1170 = vperm.xlu0 %3281, %v1116_v30  }
 0x20b   :  { %3301 = vrsqrt.f32 %v1472_v31  ;;  %1165 = vperm.xlu1 %3282, %v1115_v33  }
 0x20d   :  { %v3300_v38 = vpop.eup %3299 }
 0x20e   :  { %v1475_v28 = vmul.f32 %v3300_v38, %v1469_v34  ;;  %v673_v34 = vld [vmem:[%s5257_s16 + $0x8] sm:$0xff] }
 0x20f   :  { %v677_v38 = vld [vmem:[%s5257_s16 + $0x28] sm:$0xff] }
 0x210   :  { %1493 = vperm.xlu1 %3282, %v1475_v28   ;;  %v1479_v43 = vmul.f32 %v1475_v28, %v1459_v56 }
 0x212   :  { %v1481_v45 = vsub.f32 %v1477_v42, %v1479_v43 }
 0x214   :  { %1511 = vperm.xlu1 %3282, %v1481_v45  }
 0x215   :  { %v3302_v47 = vpop.eup %3301  ;;  %v1895_v55 = vpop.xlane.xlu1 %1894 }
 0x216   :  { %v1476_v50 = vmul.f32 %v3302_v47, %v1470_v39 }
 0x218   :  { %v1480_v58 = vmul.f32 %v1476_v50, %v1460_v22  ;;  %1498 = vperm.xlu0 %3281, %v1476_v50   ;;  %v2314_v22 = vld [vmem:[%s5265_s11] sm:$0xff]  ;;  %v674_v50 = vld [vmem:[%s5257_s16 + $0x10] sm:$0xff] }
 0x21a   :  { %v1482_v17 = vsub.f32 %v1478_v53, %v1480_v58  ;;  %v678_v53 = vld [vmem:[%s5257_s16 + $0x30] sm:$0xff] }
 0x21c   :  { %1516 = vperm.xlu0 %3281, %v1482_v17  }
 0x235   :  { %v2280_v60 = vpop.xlane.xlu0 %2279 }
 0x236   :  { %v2281_v5 = vadd.f32 %v2280_v60, %v1895_v55 }
 0x237   :  { %v2298_v63 = vpop.xlane.xlu1 %2297 }
 0x238   :  { %v2309_v56 = vmul.f32 0.00048828125, %v2281_v5 }
 0x239   :  { %v1913_v62 = vpop.xlane.xlu0 %1912 }
 0x23a   :  { %v2299_v1 = vadd.f32 %v2298_v63, %v1913_v62  ;;  %v2311_v4 = vmul.f32 %v2309_v56, %v2309_v56  ;;  %v679_v63 = vld [vmem:[%s5257_s16 + $0x38] sm:$0xff] }
 0x23c   :  { %v2310_v8 = vmul.f32 0.00048828125, %v2299_v1 }
 0x23e   :  { %v2312_v6 = vsub.f32 %v2310_v8, %v2311_v4 }
 0x240   :  { %v2313_v14 = vmax.f32 %v2312_v6, 0.0 }
 0x242   :  { %v2315_v10 = vadd.f32 1e-05, %v2313_v14 }
 0x244   :  { %3303 = vrsqrt.f32 %v2315_v10 }
 0x24e   :  { %v3304_v12 = vpop.eup %3303 }
 0x24f   :  { %v2317_v13 = vmul.f32 %v3304_v12, %v2314_v22  ;;  %v683_v41 = vpop.permute.xlu0 %682  ;;  %v1117_v22 = vld [vmem:[%s5258_s17] sm:$0xff] }
 0x250   :  { %v700_v27 = vmul.f32 %v683_v41, %v672_v25  ;;  %v704_v29 = vmul.f32 %v683_v41, %v676_v26  ;;  %v1121_v12 = vld [vmem:[%s5258_s17 + $0x20] sm:$0xff] }
 0x251   :  { %2339 = vperm.xlu1 %3282, %v2317_v13   ;;  %v2319_v18 = vmul.f32 %v2317_v13, %v2309_v56  ;;  %v675_v56 = vld [vmem:[%s5257_s16 + $0x18] sm:$0xff]  ;;  %v1118_v13 = vld [vmem:[%s5258_s17 + $0x8] sm:$0xff] }
 0x253   :  { %v688_v21 = vpop.permute.xlu1 %687  ;;  %v2320_v20 = vsub.f32 %v2318_v15, %v2319_v18  ;;  %v1122_v15 = vld [vmem:[%s5258_s17 + $0x28] sm:$0xff] }
 0x254   :  { %v701_v28 = vmul.f32 %v688_v21, %v673_v34  ;;  %v705_v42 = vmul.f32 %v688_v21, %v677_v38  ;;  %v1120_v34 = vld [vmem:[%s5258_s17 + $0x18] sm:$0xff] }
 0x255   :  { %2360 = vperm.xlu0 %3281, %v2320_v20   ;;  %v1124_v38 = vld [vmem:[%s5258_s17 + $0x38] sm:$0xff] }
 0x257   :  { %v711_v32 = vpop.permute.xlu1 %710 }
 0x258   :  { %v728_v30 = vadd.f32 %v711_v32, %v700_v27  ;;  %v732_v31 = vadd.f32 %v711_v32, %v704_v29 }
 0x25a   :  { %736 = vst.msk [vmem:[%s5257_s16] sm:$0xff] %vm307_vm1, %v728_v30  ;;  %740 = vst.msk [vmem:[%s5257_s16 + $0x20] sm:$0xff] %vm307_vm1, %v732_v31 }
 0x25b   :  { %v693_v33 = vpop.permute.xlu1 %692 }
 0x25c   :  { %v702_v58 = vmul.f32 %v693_v33, %v674_v50  ;;  %v706_v17 = vmul.f32 %v693_v33, %v678_v53 }
 0x25f   :  { %v716_v43 = vpop.permute.xlu1 %715 }
 0x260   :  { %v729_v45 = vadd.f32 %v716_v43, %v701_v28  ;;  %v733_v39 = vadd.f32 %v716_v43, %v705_v42  ;;  %v1119_v28 = vld [vmem:[%s5258_s17 + $0x10] sm:$0xff] }
 0x261   :  { %v1123_v42 = vld [vmem:[%s5258_s17 + $0x30] sm:$0xff] }
 0x262   :  { %737 = vst.msk [vmem:[%s5257_s16 + $0x8] sm:$0xff] %vm307_vm1, %v729_v45  ;;  %741 = vst.msk [vmem:[%s5257_s16 + $0x28] sm:$0xff] %vm307_vm1, %v733_v39 }
 0x263   :  { %v698_v47 = vpop.permute.xlu1 %697 }
 0x264   :  { %v703_v62 = vmul.f32 %v698_v47, %v675_v56  ;;  %v707_v1 = vmul.f32 %v698_v47, %v679_v63 }
 0x267   :  { %v721_v55 = vpop.permute.xlu1 %720 }
 0x268   :  { %v730_v60 = vadd.f32 %v721_v55, %v702_v58  ;;  %v734_v5 = vadd.f32 %v721_v55, %v706_v17 }
 0x26a   :  { %738 = vst.msk [vmem:[%s5257_s16 + $0x10] sm:$0xff] %vm307_vm1, %v730_v60  ;;  %742 = vst.msk [vmem:[%s5257_s16 + $0x30] sm:$0xff] %vm307_vm1, %v734_v5 }
 0x26b   :  { %v726_v4 = vpop.permute.xlu1 %725 }
 0x26c   :  { %v731_v8 = vadd.f32 %v726_v4, %v703_v62  ;;  %v735_v6 = vadd.f32 %v726_v4, %v707_v1 }
 0x26e   :  { %739 = vst.msk [vmem:[%s5257_s16 + $0x18] sm:$0xff] %vm307_vm1, %v731_v8  ;;  %743 = vst.msk [vmem:[%s5257_s16 + $0x38] sm:$0xff] %vm307_vm1, %v735_v6 }
 0x271   :  { %v1128_v14 = vpop.permute.xlu0 %1127 }
 0x272   :  { %v1145_v18 = vmul.f32 %v1128_v14, %v1117_v22  ;;  %v1149_v41 = vmul.f32 %v1128_v14, %v1121_v12 }
 0x277   :  { %v1133_v10 = vpop.permute.xlu1 %1132 }
 0x278   :  { %v1146_v21 = vmul.f32 %v1133_v10, %v1118_v13  ;;  %v1150_v20 = vmul.f32 %v1133_v10, %v1122_v15 }
 0x27b   :  { %v1156_v25 = vpop.permute.xlu1 %1155  ;;  %v1161_v26 = vpop.permute.xlu0 %1160 }
 0x27c   :  { %v1173_v27 = vadd.f32 %v1156_v25, %v1145_v18  ;;  %v1177_v29 = vadd.f32 %v1156_v25, %v1149_v41  ;;  %v1174_v32 = vadd.f32 %v1161_v26, %v1146_v21  ;;  %v1178_v30 = vadd.f32 %v1161_v26, %v1150_v20 }
 0x27e   :  { %1181 = vst.msk [vmem:[%s5258_s17] sm:$0xff] %vm869_vm0, %v1173_v27  ;;  %1185 = vst.msk [vmem:[%s5258_s17 + $0x20] sm:$0xff] %vm869_vm0, %v1177_v29 }
 0x27f   :  { %1182 = vst.msk [vmem:[%s5258_s17 + $0x8] sm:$0xff] %vm869_vm0, %v1174_v32  ;;  %1186 = vst.msk [vmem:[%s5258_s17 + $0x28] sm:$0xff] %vm869_vm0, %v1178_v30 }
 0x285   :  { %v1143_v31 = vpop.permute.xlu0 %1142 }
 0x286   :  { %v1138_v33 = vpop.permute.xlu1 %1137  ;;  %v1148_v43 = vmul.f32 %v1143_v31, %v1120_v34  ;;  %v1152_v45 = vmul.f32 %v1143_v31, %v1124_v38 }
 0x287   :  { %v1147_v39 = vmul.f32 %v1138_v33, %v1119_v28  ;;  %v1151_v47 = vmul.f32 %v1138_v33, %v1123_v42 }
 0x289   :  { %v1171_v50 = vpop.permute.xlu0 %1170 }
 0x28a   :  { %v1166_v53 = vpop.permute.xlu1 %1165  ;;  %v1176_v58 = vadd.f32 %v1171_v50, %v1148_v43  ;;  %v1180_v17 = vadd.f32 %v1171_v50, %v1152_v45 }
 0x28b   :  { %v1175_v55 = vadd.f32 %v1166_v53, %v1147_v39  ;;  %v1179_v60 = vadd.f32 %v1166_v53, %v1151_v47 }
 0x28c   :  { %1184 = vst.msk [vmem:[%s5258_s17 + $0x18] sm:$0xff] %vm869_vm0, %v1176_v58  ;;  %1188 = vst.msk [vmem:[%s5258_s17 + $0x38] sm:$0xff] %vm869_vm0, %v1180_v17 }
 0x28d   :  { %1183 = vst.msk [vmem:[%s5258_s17 + $0x10] sm:$0xff] %vm869_vm0, %v1175_v55  ;;  %1187 = vst.msk [vmem:[%s5258_s17 + $0x30] sm:$0xff] %vm869_vm0, %v1179_v60 }
 0x28f   :  { %v1494_v5 = vpop.permute.xlu1 %1493 }
 0x290   :  { %v1501_v56 = vmul.f32 %v1494_v5, %v4830_v51  ;;  %v1502_v63 = vmul.f32 %v1494_v5, %v4832_v52  ;;  %v1505_v62 = vmul.f32 %v1494_v5, %v4836_v54  ;;  %v1506_v1 = vmul.f32 %v1494_v5, %v4842_v57 }
 0x293   :  { %v1512_v4 = vpop.permute.xlu1 %1511 }
 0x294   :  { %v1519_v8 = vadd.f32 %v1512_v4, %v1501_v56  ;;  %v1520_v6 = vadd.f32 %v1512_v4, %v1502_v63  ;;  %v1523_v14 = vadd.f32 %v1512_v4, %v1505_v62  ;;  %v1524_v10 = vadd.f32 %v1512_v4, %v1506_v1 }
 0x296   :  { %1527 = vst [vmem:[%s5267_s18] sm:$0xff] %v1519_v8  ;;  %1528 = vst [vmem:[%s5267_s18 + $0x8] sm:$0xff] %v1520_v6 }
 0x297   :  { %1531 = vst [vmem:[%s5267_s18 + $0x20] sm:$0xff] %v1523_v14  ;;  %1532 = vst [vmem:[%s5267_s18 + $0x28] sm:$0xff] %v1524_v10  ;;  %v1499_v51 = vpop.permute.xlu0 %1498 }
 0x298   :  { %v1503_v52 = vmul.f32 %v1499_v51, %v4846_v48  ;;  %v1504_v54 = vmul.f32 %v1499_v51, %v4852_v61  ;;  %v1507_v57 = vmul.f32 %v1499_v51, %v4856_v0  ;;  %v1508_v22 = vmul.f32 %v1499_v51, %v4862_v16 }
 0x29b   :  { %v1517_v12 = vpop.permute.xlu0 %1516 }
 0x29c   :  { %v1521_v13 = vadd.f32 %v1517_v12, %v1503_v52  ;;  %v1522_v15 = vadd.f32 %v1517_v12, %v1504_v54  ;;  %v1525_v18 = vadd.f32 %v1517_v12, %v1507_v57  ;;  %v1526_v41 = vadd.f32 %v1517_v12, %v1508_v22 }
 0x29e   :  { %1529 = vst [vmem:[%s5267_s18 + $0x10] sm:$0xff] %v1521_v13  ;;  %1530 = vst [vmem:[%s5267_s18 + $0x18] sm:$0xff] %v1522_v15 }
 0x29f   :  { %1533 = vst [vmem:[%s5267_s18 + $0x30] sm:$0xff] %v1525_v18  ;;  %1534 = vst [vmem:[%s5267_s18 + $0x38] sm:$0xff] %v1526_v41 }
 0x2d0   :  { %v2340_v48 = vpop.permute.xlu1 %2339 }
 0x2d1   :  { %v2342_v61 = vmul.f32 %v2340_v48, %v4870_v7  ;;  %v2343_v0 = vmul.f32 %v2340_v48, %v4874_v9  ;;  %v2344_v16 = vmul.f32 %v2340_v48, %v4880_v11  ;;  %v2345_v21 = vmul.f32 %v2340_v48, %v4884_v19 }
 0x2d2   :  { %v2346_v20 = vmul.f32 %v2340_v48, %v4890_v23  ;;  %v2347_v25 = vmul.f32 %v2340_v48, %v4895_v24  ;;  %v2348_v26 = vmul.f32 %v2340_v48, %v4899_v35  ;;  %v2349_v27 = vmul.f32 %v2340_v48, %v4904_v36 }
 0x2d3   :  { %v2350_v29 = vmul.f32 %v2340_v48, %v4910_v37  ;;  %v2351_v32 = vmul.f32 %v2340_v48, %v4914_v40  ;;  %v2352_v7 = vmul.f32 %v2340_v48, %v4920_v44  ;;  %v2353_v9 = vmul.f32 %v2340_v48, %v4924_v46 }
 0x2d4   :  { %v2354_v11 = vmul.f32 %v2340_v48, %v4930_v59  ;;  %v2355_v19 = vmul.f32 %v2340_v48, %v4935_v49  ;;  %v2356_v23 = vmul.f32 %v2340_v48, %v4939_v3  ;;  %v2357_v24 = vmul.f32 %v2340_v48, %v4944_v2  ;;  %v2361_v30 = vpop.permute.xlu0 %2360 }
 0x2d5   :  { %v2363_v35 = vadd.f32 %v2361_v30, %v2342_v61  ;;  %v2364_v31 = vadd.f32 %v2361_v30, %v2343_v0  ;;  %v2365_v36 = vadd.f32 %v2361_v30, %v2344_v16  ;;  %v2366_v33 = vadd.f32 %v2361_v30, %v2345_v21 }
 0x2d6   :  { %v2367_v37 = vadd.f32 %v2361_v30, %v2346_v20  ;;  %v2368_v34 = vadd.f32 %v2361_v30, %v2347_v25  ;;  %v2369_v40 = vadd.f32 %v2361_v30, %v2348_v26  ;;  %v2370_v38 = vadd.f32 %v2361_v30, %v2349_v27 }
 0x2d7   :  { %v2371_v44 = vadd.f32 %v2361_v30, %v2350_v29  ;;  %v2372_v28 = vadd.f32 %v2361_v30, %v2351_v32  ;;  %v2373_v46 = vadd.f32 %v2361_v30, %v2352_v7  ;;  %v2374_v42 = vadd.f32 %v2361_v30, %v2353_v9  ;;  %2379 = vst [vmem:[%s5268_s19] sm:$0xff] %v2363_v35 }
 0x2d8   :  { %2380 = vst [vmem:[%s5268_s19 + $0x8] sm:$0xff] %v2364_v31  ;;  %2381 = vst [vmem:[%s5268_s19 + $0x10] sm:$0xff] %v2365_v36  ;;  %v2375_v59 = vadd.f32 %v2361_v30, %v2354_v11  ;;  %v2376_v49 = vadd.f32 %v2361_v30, %v2355_v19  ;;  %v2377_v3 = vadd.f32 %v2361_v30, %v2356_v23 }
 0x2d9   :  { %2382 = vst [vmem:[%s5268_s19 + $0x18] sm:$0xff] %v2366_v33  ;;  %v2378_v2 = vadd.f32 %v2361_v30, %v2357_v24  ;;  %2383 = vst [vmem:[%s5268_s19 + $0x20] sm:$0xff] %v2367_v37 }
 0x2da   :  { %2384 = vst [vmem:[%s5268_s19 + $0x28] sm:$0xff] %v2368_v34  ;;  %2385 = vst [vmem:[%s5268_s19 + $0x30] sm:$0xff] %v2369_v40 }
 0x2db   :  { %2386 = vst [vmem:[%s5268_s19 + $0x38] sm:$0xff] %v2370_v38  ;;  %2387 = vst [vmem:[%s5268_s19 + $0x40] sm:$0xff] %v2371_v44 }
 0x2dc   :  { %2388 = vst [vmem:[%s5268_s19 + $0x48] sm:$0xff] %v2372_v28  ;;  %2389 = vst [vmem:[%s5268_s19 + $0x50] sm:$0xff] %v2373_v46 }
 0x2dd   :  { %2390 = vst [vmem:[%s5268_s19 + $0x58] sm:$0xff] %v2374_v42  ;;  %2391 = vst [vmem:[%s5268_s19 + $0x60] sm:$0xff] %v2375_v59 }
 0x2de   :  { %2392 = vst [vmem:[%s5268_s19 + $0x68] sm:$0xff] %v2376_v49  ;;  %2393 = vst [vmem:[%s5268_s19 + $0x70] sm:$0xff] %v2377_v3 }
 0x2df   :  { %2394 = vst [vmem:[%s5268_s19 + $0x78] sm:$0xff] %v2378_v2 }

</bundles_post_ra>
